<compile_context>
chip_gen: v7x
topology: tpu7x:2x2x1
jax: 0.10.0
libtpu: 0.0.40
codegen_flags: <defaults>
</compile_context>

<pallas_src>
import jax
import jax.numpy as jnp
import numpy as np
from jax import lax
from jax.experimental import pallas as pl
from jax.experimental.pallas import tpu as pltpu

_K = 31                      # avg_pool2d kernel size
_PAD = 15                    # avg_pool2d padding
_INV_AREA = 1.0 / float(_K * _K)   # count_include_pad=True -> constant divisor


def _band_matrix(n):
    """(n, n) float32 matrix with B[i, j] = 1 iff |i - j| <= 15.

    (Bh @ t @ Bw) reproduces the zero-padded 31x31 box *sum* exactly
    (entries are 0/1, sums <= 961, exact in f32 accumulation)."""
    idx = jnp.arange(n, dtype=jnp.int32)
    return (jnp.abs(idx[:, None] - idx[None, :]) <= _PAD).astype(jnp.float32)


def _weighted_loss_kernel(x_ref, t_ref, bh_ref, bw_ref, o_ref):
    B = x_ref.shape[0]            # images per grid step (static)
    bh = bh_ref[...]              # (H, H) band matrix, VMEM-resident
    bw = bw_ref[...]              # (W, W) band matrix, VMEM-resident

    # TODO(synk): static Python unroll over B; for very large H/W a
    # lax.fori_loop would bound live ranges more tightly.
    for b in range(B):
        xb = x_ref[b].astype(jnp.float32)   # (H, W) logits
        tb = t_ref[b].astype(jnp.float32)   # (H, W) targets (0/1)

        # 31x31 box sum via two MXU matmuls (separable banded filter).
        ps = jnp.dot(bh, tb, preferred_element_type=jnp.float32)   # rows
        ps = jnp.dot(ps, bw, preferred_element_type=jnp.float32)   # cols
        pooled = ps * _INV_AREA
        weit = 1.0 + 5.0 * jnp.abs(pooled - tb)

        # binary_cross_entropy_with_logits, reduction='none' (stable form)
        bce = jnp.maximum(xb, 0.0) - xb * tb + jnp.log1p(jnp.exp(-jnp.abs(xb)))
        pred = jax.nn.sigmoid(xb)

        sum_w = jnp.sum(weit, keepdims=True)                 # (1, 1)
        sum_wb = jnp.sum(weit * bce, keepdims=True)          # (1, 1)
        inter = jnp.sum(pred * tb * weit, keepdims=True)     # (1, 1)
        union = jnp.sum((pred + tb) * weit, keepdims=True)   # (1, 1)

        wbce = sum_wb / sum_w
        wiou = 1.0 - (inter + 1.0) / (union - inter + 1.0)
        loss = wbce + wiou                                    # (1, 1)

        # lane-dense row store (one unmasked row of the (B, 128) output block)
        o_ref[pl.ds(b, 1), :] = jnp.broadcast_to(loss, (1, 128))


def weighted_loss(inputs, targets, *, images_per_step=8,
                  vmem_limit_bytes=48 * 1024 * 1024):
    """Pallas version of Weighted.forward. inputs/targets: (N, C, H, W)."""
    N, C, H, W = inputs.shape
    M = N * C

    # images per block: sublane multiple (keeps the output block layout-legal)
    B = max(8, ((int(images_per_step) + 7) // 8) * 8)
    G = pl.cdiv(M, B)
    M_pad = G * B

    x = inputs.reshape(M, H, W)
    t = targets.reshape(M, H, W)
    if M_pad != M:
        pad = M_pad - M
        x = jnp.concatenate([x, jnp.zeros((pad, H, W), x.dtype)], axis=0)
        t = jnp.concatenate([t, jnp.zeros((pad, H, W), t.dtype)], axis=0)

    bh = _band_matrix(H)
    bw = _band_matrix(W)

    out = pl.pallas_call(
        _weighted_loss_kernel,
        out_shape=jax.ShapeDtypeStruct((M_pad, 128), jnp.float32),
        grid_spec=pltpu.PrefetchScalarGridSpec(
            num_scalar_prefetch=0,
            grid=(G,),
            in_specs=[
                pl.BlockSpec((B, H, W), lambda i: (i, 0, 0)),   # logits
                pl.BlockSpec((B, H, W), lambda i: (i, 0, 0)),   # targets
                pl.BlockSpec((H, H), lambda i: (0, 0)),         # Bh (resident)
                pl.BlockSpec((W, W), lambda i: (0, 0)),         # Bw (resident)
            ],
            out_specs=pl.BlockSpec((B, 128), lambda i: (i, 0)),
        ),
        compiler_params=pltpu.CompilerParams(
            dimension_semantics=("parallel",),
            vmem_limit_bytes=vmem_limit_bytes),
    )(x, t, bh, bw)

    per_image = out[:M, 0]          # drop batch padding, take lane 0
    return jnp.mean(per_image)      # .mean() over (N, C)


def weighted_loss_ref(inputs, targets):
    """Pure-JAX reference (mirrors the PyTorch forward exactly)."""
    x = inputs.astype(jnp.float32)
    t = targets.astype(jnp.float32)
    pooled = lax.reduce_window(
        t, 0.0, lax.add, (1, 1, _K, _K), (1, 1, 1, 1),
        [(0, 0), (0, 0), (_PAD, _PAD), (_PAD, _PAD)]) * _INV_AREA
    weit = 1.0 + 5.0 * jnp.abs(pooled - t)
    bce = jnp.maximum(x, 0.0) - x * t + jnp.log1p(jnp.exp(-jnp.abs(x)))
    wbce = (weit * bce).sum(axis=(2, 3)) / weit.sum(axis=(2, 3))
    pred = jax.nn.sigmoid(x)
    inter = (pred * t * weit).sum(axis=(2, 3))
    union = ((pred + t) * weit).sum(axis=(2, 3))
    wiou = 1.0 - (inter + 1.0) / (union - inter + 1.0)
    return jnp.mean(wbce + wiou)


if __name__ == "__main__":
    # Weighted() has no learnable parameters; smooth=0.001 is unused by the
    # PyTorch forward body, so it is ignored here as well.
    key = jax.random.PRNGKey(0)
    k1, k2 = jax.random.split(key)
    N, C, H, W = 2, 1, 16, 16
    inputs = jax.random.normal(k1, (N, C, H, W), dtype=jnp.float32)        # logits
    targets = (jax.random.uniform(k2, (N, C, H, W)) > 0.5).astype(jnp.float32)

    loss = jax.block_until_ready(weighted_loss(inputs, targets))
    ref = jax.block_until_ready(weighted_loss_ref(inputs, targets))
    np.testing.assert_allclose(np.asarray(loss), np.asarray(ref),
                               rtol=2e-4, atol=2e-4)
    print("KERNEL_OK")
</pallas_src>

<mosaic_0001>
module attributes {stable_mosaic.version = 11 : i64} {
  func.func @_weighted_loss_kernel(%arg0: i32, %arg1: memref<8x16x16xf32, #tpu.memory_space<vmem>>, %arg2: memref<8x16x16xf32, #tpu.memory_space<vmem>>, %arg3: memref<16x16xf32, #tpu.memory_space<vmem>>, %arg4: memref<16x16xf32, #tpu.memory_space<vmem>>, %arg5: memref<8x128xf32, #tpu.memory_space<vmem>>) attributes {dimension_semantics = [#tpu.dimension_semantics<parallel>], iteration_bounds = array<i64: 1>, scalar_prefetch = 0 : i64, scratch_operands = 0 : i64, tpu.core_type = #tpu.core_type<tc>, window_params = [{transform_indices = @transform_0, window_bounds = array<i64: 8, 16, 16>}, {transform_indices = @transform_1, window_bounds = array<i64: 8, 16, 16>}, {pipeline_mode = #tpu.pipeline_mode<synchronous>, transform_indices = @transform_2, window_bounds = array<i64: 16, 16>}, {pipeline_mode = #tpu.pipeline_mode<synchronous>, transform_indices = @transform_3, window_bounds = array<i64: 16, 16>}, {transform_indices = @transform_4, window_bounds = array<i64: 8, 128>}]} {
    %c0 = arith.constant 0 : index
    %c0_0 = arith.constant 0 : index
    %0 = vector.load %arg3[%c0, %c0_0] : memref<16x16xf32, #tpu.memory_space<vmem>>, vector<16x16xf32>
    %c0_1 = arith.constant 0 : index
    %c0_2 = arith.constant 0 : index
    %1 = vector.load %arg4[%c0_1, %c0_2] : memref<16x16xf32, #tpu.memory_space<vmem>>, vector<16x16xf32>
    %c0_3 = arith.constant 0 : index
    %c0_4 = arith.constant 0 : index
    %c0_5 = arith.constant 0 : index
    %2 = vector.load %arg1[%c0_3, %c0_4, %c0_5] : memref<8x16x16xf32, #tpu.memory_space<vmem>>, vector<1x16x16xf32>
    %3 = vector.shape_cast %2 : vector<1x16x16xf32> to vector<16x16xf32>
    %c0_6 = arith.constant 0 : index
    %c0_7 = arith.constant 0 : index
    %c0_8 = arith.constant 0 : index
    %4 = vector.load %arg2[%c0_6, %c0_7, %c0_8] : memref<8x16x16xf32, #tpu.memory_space<vmem>>, vector<1x16x16xf32>
    %5 = vector.shape_cast %4 : vector<1x16x16xf32> to vector<16x16xf32>
    %cst = arith.constant dense<0.000000e+00> : vector<16x16xf32>
    %6 = tpu.matmul %0, %5, %cst {dimension_numbers = #tpu.dot_dimension_numbers<[1], [0], [0], [1], [0, 0, 1, 1], [], []>} : vector<16x16xf32>, vector<16x16xf32>, vector<16x16xf32> -> vector<16x16xf32>
    %cst_9 = arith.constant dense<0.000000e+00> : vector<16x16xf32>
    %7 = tpu.matmul %6, %1, %cst_9 {dimension_numbers = #tpu.dot_dimension_numbers<[1], [0], [0], [1], [0, 0, 1, 1], [], []>} : vector<16x16xf32>, vector<16x16xf32>, vector<16x16xf32> -> vector<16x16xf32>
    %cst_10 = arith.constant 0.00104058278 : f32
    %8 = vector.broadcast %cst_10 : f32 to vector<16x16xf32>
    %9 = arith.mulf %7, %8 : vector<16x16xf32>
    %10 = arith.subf %9, %5 : vector<16x16xf32>
    %11 = math.absf %10 : vector<16x16xf32>
    %cst_11 = arith.constant 5.000000e+00 : f32
    %12 = vector.broadcast %cst_11 : f32 to vector<16x16xf32>
    %13 = arith.mulf %12, %11 : vector<16x16xf32>
    %cst_12 = arith.constant 1.000000e+00 : f32
    %14 = vector.broadcast %cst_12 : f32 to vector<16x16xf32>
    %15 = arith.addf %14, %13 : vector<16x16xf32>
    %cst_13 = arith.constant 0.000000e+00 : f32
    %16 = vector.broadcast %cst_13 : f32 to vector<16x16xf32>
    %17 = arith.maximumf %3, %16 : vector<16x16xf32>
    %18 = arith.mulf %3, %5 : vector<16x16xf32>
    %19 = arith.subf %17, %18 : vector<16x16xf32>
    %20 = math.absf %3 : vector<16x16xf32>
    %cst_14 = arith.constant 0.000000e+00 : f32
    %21 = vector.broadcast %cst_14 : f32 to vector<16x16xf32>
    %22 = arith.subf %21, %20 : vector<16x16xf32>
    %23 = math.exp %22 : vector<16x16xf32>
    %24 = math.log1p %23 : vector<16x16xf32>
    %25 = arith.addf %19, %24 : vector<16x16xf32>
    %26 = arith.negf %3 : vector<16x16xf32>
    %27 = math.exp %26 : vector<16x16xf32>
    %cst_15 = arith.constant 1.000000e+00 : f32
    %28 = vector.broadcast %cst_15 : f32 to vector<16x16xf32>
    %29 = arith.addf %28, %27 : vector<16x16xf32>
    %30 = arith.divf %28, %29 : vector<16x16xf32>
    %31 = vector.shape_cast %15 : vector<16x16xf32> to vector<1x16x16xf32>
    %cst_16 = arith.constant dense<0.000000e+00> : vector<1xf32>
    %32 = vector.multi_reduction <add>, %31, %cst_16 [1, 2] : vector<1x16x16xf32> to vector<1xf32>
    %33 = vector.shape_cast %32 : vector<1xf32> to vector<1x1x1xf32>
    %34 = vector.extract %33[0, 0, 0] : f32 from vector<1x1x1xf32>
    %35 = vector.broadcast %34 : f32 to vector<1x1xf32>
    %36 = arith.mulf %15, %25 : vector<16x16xf32>
    %37 = vector.shape_cast %36 : vector<16x16xf32> to vector<1x16x16xf32>
    %cst_17 = arith.constant dense<0.000000e+00> : vector<1xf32>
    %38 = vector.multi_reduction <add>, %37, %cst_17 [1, 2] : vector<1x16x16xf32> to vector<1xf32>
    %39 = vector.shape_cast %38 : vector<1xf32> to vector<1x1x1xf32>
    %40 = vector.extract %39[0, 0, 0] : f32 from vector<1x1x1xf32>
    %41 = vector.broadcast %40 : f32 to vector<1x1xf32>
    %42 = arith.mulf %30, %5 : vector<16x16xf32>
    %43 = arith.mulf %42, %15 : vector<16x16xf32>
    %44 = vector.shape_cast %43 : vector<16x16xf32> to vector<1x16x16xf32>
    %cst_18 = arith.constant dense<0.000000e+00> : vector<1xf32>
    %45 = vector.multi_reduction <add>, %44, %cst_18 [1, 2] : vector<1x16x16xf32> to vector<1xf32>
    %46 = vector.shape_cast %45 : vector<1xf32> to vector<1x1x1xf32>
    %47 = vector.extract %46[0, 0, 0] : f32 from vector<1x1x1xf32>
    %48 = vector.broadcast %47 : f32 to vector<1x1xf32>
    %49 = arith.addf %30, %5 : vector<16x16xf32>
    %50 = arith.mulf %49, %15 : vector<16x16xf32>
    %51 = vector.shape_cast %50 : vector<16x16xf32> to vector<1x16x16xf32>
    %cst_19 = arith.constant dense<0.000000e+00> : vector<1xf32>
    %52 = vector.multi_reduction <add>, %51, %cst_19 [1, 2] : vector<1x16x16xf32> to vector<1xf32>
    %53 = vector.shape_cast %52 : vector<1xf32> to vector<1x1x1xf32>
    %54 = vector.extract %53[0, 0, 0] : f32 from vector<1x1x1xf32>
    %55 = vector.broadcast %54 : f32 to vector<1x1xf32>
    %56 = arith.divf %41, %35 : vector<1x1xf32>
    %cst_20 = arith.constant 1.000000e+00 : f32
    %57 = vector.broadcast %cst_20 : f32 to vector<1x1xf32>
    %58 = arith.addf %48, %57 : vector<1x1xf32>
    %59 = arith.subf %55, %48 : vector<1x1xf32>
    %cst_21 = arith.constant 1.000000e+00 : f32
    %60 = vector.broadcast %cst_21 : f32 to vector<1x1xf32>
    %61 = arith.addf %59, %60 : vector<1x1xf32>
    %62 = arith.divf %58, %61 : vector<1x1xf32>
    %cst_22 = arith.constant 1.000000e+00 : f32
    %63 = vector.broadcast %cst_22 : f32 to vector<1x1xf32>
    %64 = arith.subf %63, %62 : vector<1x1xf32>
    %65 = arith.addf %56, %64 : vector<1x1xf32>
    %66 = vector.shape_cast %65 : vector<1x1xf32> to vector<1x1xf32>
    %67 = vector.broadcast %66 : vector<1x1xf32> to vector<1x128xf32>
    %c0_23 = arith.constant 0 : index
    %c0_24 = arith.constant 0 : index
    %68 = vector.load %arg5[%c0_23, %c0_24] : memref<8x128xf32, #tpu.memory_space<vmem>>, vector<1x128xf32>
    tpu.vector_store %arg5[%c0_23, %c0_24], %67 {strides = array<i32>} : memref<8x128xf32, #tpu.memory_space<vmem>>, vector<1x128xf32>,
    %c1 = arith.constant 1 : index
    %c0_25 = arith.constant 0 : index
    %c0_26 = arith.constant 0 : index
    %69 = vector.load %arg1[%c1, %c0_25, %c0_26] : memref<8x16x16xf32, #tpu.memory_space<vmem>>, vector<1x16x16xf32>
    %70 = vector.shape_cast %69 : vector<1x16x16xf32> to vector<16x16xf32>
    %c1_27 = arith.constant 1 : index
    %c0_28 = arith.constant 0 : index
    %c0_29 = arith.constant 0 : index
    %71 = vector.load %arg2[%c1_27, %c0_28, %c0_29] : memref<8x16x16xf32, #tpu.memory_space<vmem>>, vector<1x16x16xf32>
    %72 = vector.shape_cast %71 : vector<1x16x16xf32> to vector<16x16xf32>
    %cst_30 = arith.constant dense<0.000000e+00> : vector<16x16xf32>
    %73 = tpu.matmul %0, %72, %cst_30 {dimension_numbers = #tpu.dot_dimension_numbers<[1], [0], [0], [1], [0, 0, 1, 1], [], []>} : vector<16x16xf32>, vector<16x16xf32>, vector<16x16xf32> -> vector<16x16xf32>
    %cst_31 = arith.constant dense<0.000000e+00> : vector<16x16xf32>
    %74 = tpu.matmul %73, %1, %cst_31 {dimension_numbers = #tpu.dot_dimension_numbers<[1], [0], [0], [1], [0, 0, 1, 1], [], []>} : vector<16x16xf32>, vector<16x16xf32>, vector<16x16xf32> -> vector<16x16xf32>
    %cst_32 = arith.constant 0.00104058278 : f32
    %75 = vector.broadcast %cst_32 : f32 to vector<16x16xf32>
    %76 = arith.mulf %74, %75 : vector<16x16xf32>
    %77 = arith.subf %76, %72 : vector<16x16xf32>
    %78 = math.absf %77 : vector<16x16xf32>
    %cst_33 = arith.constant 5.000000e+00 : f32
    %79 = vector.broadcast %cst_33 : f32 to vector<16x16xf32>
    %80 = arith.mulf %79, %78 : vector<16x16xf32>
    %cst_34 = arith.constant 1.000000e+00 : f32
    %81 = vector.broadcast %cst_34 : f32 to vector<16x16xf32>
    %82 = arith.addf %81, %80 : vector<16x16xf32>
    %cst_35 = arith.constant 0.000000e+00 : f32
    %83 = vector.broadcast %cst_35 : f32 to vector<16x16xf32>
    %84 = arith.maximumf %70, %83 : vector<16x16xf32>
    %85 = arith.mulf %70, %72 : vector<16x16xf32>
    %86 = arith.subf %84, %85 : vector<16x16xf32>
    %87 = math.absf %70 : vector<16x16xf32>
    %cst_36 = arith.constant 0.000000e+00 : f32
    %88 = vector.broadcast %cst_36 : f32 to vector<16x16xf32>
    %89 = arith.subf %88, %87 : vector<16x16xf32>
    %90 = math.exp %89 : vector<16x16xf32>
    %91 = math.log1p %90 : vector<16x16xf32>
    %92 = arith.addf %86, %91 : vector<16x16xf32>
    %93 = arith.negf %70 : vector<16x16xf32>
    %94 = math.exp %93 : vector<16x16xf32>
    %cst_37 = arith.constant 1.000000e+00 : f32
    %95 = vector.broadcast %cst_37 : f32 to vector<16x16xf32>
    %96 = arith.addf %95, %94 : vector<16x16xf32>
    %97 = arith.divf %95, %96 : vector<16x16xf32>
    %98 = vector.shape_cast %82 : vector<16x16xf32> to vector<1x16x16xf32>
    %cst_38 = arith.constant dense<0.000000e+00> : vector<1xf32>
    %99 = vector.multi_reduction <add>, %98, %cst_38 [1, 2] : vector<1x16x16xf32> to vector<1xf32>
    %100 = vector.shape_cast %99 : vector<1xf32> to vector<1x1x1xf32>
    %101 = vector.extract %100[0, 0, 0] : f32 from vector<1x1x1xf32>
    %102 = vector.broadcast %101 : f32 to vector<1x1xf32>
    %103 = arith.mulf %82, %92 : vector<16x16xf32>
    %104 = vector.shape_cast %103 : vector<16x16xf32> to vector<1x16x16xf32>
    %cst_39 = arith.constant dense<0.000000e+00> : vector<1xf32>
    %105 = vector.multi_reduction <add>, %104, %cst_39 [1, 2] : vector<1x16x16xf32> to vector<1xf32>
    %106 = vector.shape_cast %105 : vector<1xf32> to vector<1x1x1xf32>
    %107 = vector.extract %106[0, 0, 0] : f32 from vector<1x1x1xf32>
    %108 = vector.broadcast %107 : f32 to vector<1x1xf32>
    %109 = arith.mulf %97, %72 : vector<16x16xf32>
    %110 = arith.mulf %109, %82 : vector<16x16xf32>
    %111 = vector.shape_cast %110 : vector<16x16xf32> to vector<1x16x16xf32>
    %cst_40 = arith.constant dense<0.000000e+00> : vector<1xf32>
    %112 = vector.multi_reduction <add>, %111, %cst_40 [1, 2] : vector<1x16x16xf32> to vector<1xf32>
    %113 = vector.shape_cast %112 : vector<1xf32> to vector<1x1x1xf32>
    %114 = vector.extract %113[0, 0, 0] : f32 from vector<1x1x1xf32>
    %115 = vector.broadcast %114 : f32 to vector<1x1xf32>
    %116 = arith.addf %97, %72 : vector<16x16xf32>
    %117 = arith.mulf %116, %82 : vector<16x16xf32>
    %118 = vector.shape_cast %117 : vector<16x16xf32> to vector<1x16x16xf32>
    %cst_41 = arith.constant dense<0.000000e+00> : vector<1xf32>
    %119 = vector.multi_reduction <add>, %118, %cst_41 [1, 2] : vector<1x16x16xf32> to vector<1xf32>
    %120 = vector.shape_cast %119 : vector<1xf32> to vector<1x1x1xf32>
    %121 = vector.extract %120[0, 0, 0] : f32 from vector<1x1x1xf32>
    %122 = vector.broadcast %121 : f32 to vector<1x1xf32>
    %123 = arith.divf %108, %102 : vector<1x1xf32>
    %cst_42 = arith.constant 1.000000e+00 : f32
    %124 = vector.broadcast %cst_42 : f32 to vector<1x1xf32>
    %125 = arith.addf %115, %124 : vector<1x1xf32>
    %126 = arith.subf %122, %115 : vector<1x1xf32>
    %cst_43 = arith.constant 1.000000e+00 : f32
    %127 = vector.broadcast %cst_43 : f32 to vector<1x1xf32>
    %128 = arith.addf %126, %127 : vector<1x1xf32>
    %129 = arith.divf %125, %128 : vector<1x1xf32>
    %cst_44 = arith.constant 1.000000e+00 : f32
    %130 = vector.broadcast %cst_44 : f32 to vector<1x1xf32>
    %131 = arith.subf %130, %129 : vector<1x1xf32>
    %132 = arith.addf %123, %131 : vector<1x1xf32>
    %133 = vector.shape_cast %132 : vector<1x1xf32> to vector<1x1xf32>
    %134 = vector.broadcast %133 : vector<1x1xf32> to vector<1x128xf32>
    %c1_45 = arith.constant 1 : index
    %c0_46 = arith.constant 0 : index
    %135 = vector.load %arg5[%c1_45, %c0_46] : memref<8x128xf32, #tpu.memory_space<vmem>>, vector<1x128xf32>
    tpu.vector_store %arg5[%c1_45, %c0_46], %134 {strides = array<i32>} : memref<8x128xf32, #tpu.memory_space<vmem>>, vector<1x128xf32>,
    %c2 = arith.constant 2 : index
    %c0_47 = arith.constant 0 : index
    %c0_48 = arith.constant 0 : index
    %136 = vector.load %arg1[%c2, %c0_47, %c0_48] : memref<8x16x16xf32, #tpu.memory_space<vmem>>, vector<1x16x16xf32>
    %137 = vector.shape_cast %136 : vector<1x16x16xf32> to vector<16x16xf32>
    %c2_49 = arith.constant 2 : index
    %c0_50 = arith.constant 0 : index
    %c0_51 = arith.constant 0 : index
    %138 = vector.load %arg2[%c2_49, %c0_50, %c0_51] : memref<8x16x16xf32, #tpu.memory_space<vmem>>, vector<1x16x16xf32>
    %139 = vector.shape_cast %138 : vector<1x16x16xf32> to vector<16x16xf32>
    %cst_52 = arith.constant dense<0.000000e+00> : vector<16x16xf32>
    %140 = tpu.matmul %0, %139, %cst_52 {dimension_numbers = #tpu.dot_dimension_numbers<[1], [0], [0], [1], [0, 0, 1, 1], [], []>} : vector<16x16xf32>, vector<16x16xf32>, vector<16x16xf32> -> vector<16x16xf32>
    %cst_53 = arith.constant dense<0.000000e+00> : vector<16x16xf32>
    %141 = tpu.matmul %140, %1, %cst_53 {dimension_numbers = #tpu.dot_dimension_numbers<[1], [0], [0], [1], [0, 0, 1, 1], [], []>} : vector<16x16xf32>, vector<16x16xf32>, vector<16x16xf32> -> vector<16x16xf32>
    %cst_54 = arith.constant 0.00104058278 : f32
    %142 = vector.broadcast %cst_54 : f32 to vector<16x16xf32>
    %143 = arith.mulf %141, %142 : vector<16x16xf32>
    %144 = arith.subf %143, %139 : vector<16x16xf32>
    %145 = math.absf %144 : vector<16x16xf32>
    %cst_55 = arith.constant 5.000000e+00 : f32
    %146 = vector.broadcast %cst_55 : f32 to vector<16x16xf32>
    %147 = arith.mulf %146, %145 : vector<16x16xf32>
    %cst_56 = arith.constant 1.000000e+00 : f32
    %148 = vector.broadcast %cst_56 : f32 to vector<16x16xf32>
    %149 = arith.addf %148, %147 : vector<16x16xf32>
    %cst_57 = arith.constant 0.000000e+00 : f32
    %150 = vector.broadcast %cst_57 : f32 to vector<16x16xf32>
    %151 = arith.maximumf %137, %150 : vector<16x16xf32>
    %152 = arith.mulf %137, %139 : vector<16x16xf32>
    %153 = arith.subf %151, %152 : vector<16x16xf32>
    %154 = math.absf %137 : vector<16x16xf32>
    %cst_58 = arith.constant 0.000000e+00 : f32
    %155 = vector.broadcast %cst_58 : f32 to vector<16x16xf32>
    %156 = arith.subf %155, %154 : vector<16x16xf32>
    %157 = math.exp %156 : vector<16x16xf32>
    %158 = math.log1p %157 : vector<16x16xf32>
    %159 = arith.addf %153, %158 : vector<16x16xf32>
    %160 = arith.negf %137 : vector<16x16xf32>
    %161 = math.exp %160 : vector<16x16xf32>
    %cst_59 = arith.constant 1.000000e+00 : f32
    %162 = vector.broadcast %cst_59 : f32 to vector<16x16xf32>
    %163 = arith.addf %162, %161 : vector<16x16xf32>
    %164 = arith.divf %162, %163 : vector<16x16xf32>
    %165 = vector.shape_cast %149 : vector<16x16xf32> to vector<1x16x16xf32>
    %cst_60 = arith.constant dense<0.000000e+00> : vector<1xf32>
    %166 = vector.multi_reduction <add>, %165, %cst_60 [1, 2] : vector<1x16x16xf32> to vector<1xf32>
    %167 = vector.shape_cast %166 : vector<1xf32> to vector<1x1x1xf32>
    %168 = vector.extract %167[0, 0, 0] : f32 from vector<1x1x1xf32>
    %169 = vector.broadcast %168 : f32 to vector<1x1xf32>
    %170 = arith.mulf %149, %159 : vector<16x16xf32>
    %171 = vector.shape_cast %170 : vector<16x16xf32> to vector<1x16x16xf32>
    %cst_61 = arith.constant dense<0.000000e+00> : vector<1xf32>
    %172 = vector.multi_reduction <add>, %171, %cst_61 [1, 2] : vector<1x16x16xf32> to vector<1xf32>
    %173 = vector.shape_cast %172 : vector<1xf32> to vector<1x1x1xf32>
    %174 = vector.extract %173[0, 0, 0] : f32 from vector<1x1x1xf32>
    %175 = vector.broadcast %174 : f32 to vector<1x1xf32>
    %176 = arith.mulf %164, %139 : vector<16x16xf32>
    %177 = arith.mulf %176, %149 : vector<16x16xf32>
    %178 = vector.shape_cast %177 : vector<16x16xf32> to vector<1x16x16xf32>
    %cst_62 = arith.constant dense<0.000000e+00> : vector<1xf32>
    %179 = vector.multi_reduction <add>, %178, %cst_62 [1, 2] : vector<1x16x16xf32> to vector<1xf32>
    %180 = vector.shape_cast %179 : vector<1xf32> to vector<1x1x1xf32>
    %181 = vector.extract %180[0, 0, 0] : f32 from vector<1x1x1xf32>
    %182 = vector.broadcast %181 : f32 to vector<1x1xf32>
    %183 = arith.addf %164, %139 : vector<16x16xf32>
    %184 = arith.mulf %183, %149 : vector<16x16xf32>
    %185 = vector.shape_cast %184 : vector<16x16xf32> to vector<1x16x16xf32>
    %cst_63 = arith.constant dense<0.000000e+00> : vector<1xf32>
    %186 = vector.multi_reduction <add>, %185, %cst_63 [1, 2] : vector<1x16x16xf32> to vector<1xf32>
    %187 = vector.shape_cast %186 : vector<1xf32> to vector<1x1x1xf32>
    %188 = vector.extract %187[0, 0, 0] : f32 from vector<1x1x1xf32>
    %189 = vector.broadcast %188 : f32 to vector<1x1xf32>
    %190 = arith.divf %175, %169 : vector<1x1xf32>
    %cst_64 = arith.constant 1.000000e+00 : f32
    %191 = vector.broadcast %cst_64 : f32 to vector<1x1xf32>
    %192 = arith.addf %182, %191 : vector<1x1xf32>
    %193 = arith.subf %189, %182 : vector<1x1xf32>
    %cst_65 = arith.constant 1.000000e+00 : f32
    %194 = vector.broadcast %cst_65 : f32 to vector<1x1xf32>
    %195 = arith.addf %193, %194 : vector<1x1xf32>
    %196 = arith.divf %192, %195 : vector<1x1xf32>
    %cst_66 = arith.constant 1.000000e+00 : f32
    %197 = vector.broadcast %cst_66 : f32 to vector<1x1xf32>
    %198 = arith.subf %197, %196 : vector<1x1xf32>
    %199 = arith.addf %190, %198 : vector<1x1xf32>
    %200 = vector.shape_cast %199 : vector<1x1xf32> to vector<1x1xf32>
    %201 = vector.broadcast %200 : vector<1x1xf32> to vector<1x128xf32>
    %c2_67 = arith.constant 2 : index
    %c0_68 = arith.constant 0 : index
    %202 = vector.load %arg5[%c2_67, %c0_68] : memref<8x128xf32, #tpu.memory_space<vmem>>, vector<1x128xf32>
    tpu.vector_store %arg5[%c2_67, %c0_68], %201 {strides = array<i32>} : memref<8x128xf32, #tpu.memory_space<vmem>>, vector<1x128xf32>,
    %c3 = arith.constant 3 : index
    %c0_69 = arith.constant 0 : index
    %c0_70 = arith.constant 0 : index
    %203 = vector.load %arg1[%c3, %c0_69, %c0_70] : memref<8x16x16xf32, #tpu.memory_space<vmem>>, vector<1x16x16xf32>
    %204 = vector.shape_cast %203 : vector<1x16x16xf32> to vector<16x16xf32>
    %c3_71 = arith.constant 3 : index
    %c0_72 = arith.constant 0 : index
    %c0_73 = arith.constant 0 : index
    %205 = vector.load %arg2[%c3_71, %c0_72, %c0_73] : memref<8x16x16xf32, #tpu.memory_space<vmem>>, vector<1x16x16xf32>
    %206 = vector.shape_cast %205 : vector<1x16x16xf32> to vector<16x16xf32>
    %cst_74 = arith.constant dense<0.000000e+00> : vector<16x16xf32>
    %207 = tpu.matmul %0, %206, %cst_74 {dimension_numbers = #tpu.dot_dimension_numbers<[1], [0], [0], [1], [0, 0, 1, 1], [], []>} : vector<16x16xf32>, vector<16x16xf32>, vector<16x16xf32> -> vector<16x16xf32>
    %cst_75 = arith.constant dense<0.000000e+00> : vector<16x16xf32>
    %208 = tpu.matmul %207, %1, %cst_75 {dimension_numbers = #tpu.dot_dimension_numbers<[1], [0], [0], [1], [0, 0, 1, 1], [], []>} : vector<16x16xf32>, vector<16x16xf32>, vector<16x16xf32> -> vector<16x16xf32>
    %cst_76 = arith.constant 0.00104058278 : f32
    %209 = vector.broadcast %cst_76 : f32 to vector<16x16xf32>
    %210 = arith.mulf %208, %209 : vector<16x16xf32>
    %211 = arith.subf %210, %206 : vector<16x16xf32>
    %212 = math.absf %211 : vector<16x16xf32>
    %cst_77 = arith.constant 5.000000e+00 : f32
    %213 = vector.broadcast %cst_77 : f32 to vector<16x16xf32>
    %214 = arith.mulf %213, %212 : vector<16x16xf32>
    %cst_78 = arith.constant 1.000000e+00 : f32
    %215 = vector.broadcast %cst_78 : f32 to vector<16x16xf32>
    %216 = arith.addf %215, %214 : vector<16x16xf32>
    %cst_79 = arith.constant 0.000000e+00 : f32
    %217 = vector.broadcast %cst_79 : f32 to vector<16x16xf32>
    %218 = arith.maximumf %204, %217 : vector<16x16xf32>
    %219 = arith.mulf %204, %206 : vector<16x16xf32>
    %220 = arith.subf %218, %219 : vector<16x16xf32>
    %221 = math.absf %204 : vector<16x16xf32>
    %cst_80 = arith.constant 0.000000e+00 : f32
    %222 = vector.broadcast %cst_80 : f32 to vector<16x16xf32>
    %223 = arith.subf %222, %221 : vector<16x16xf32>
    %224 = math.exp %223 : vector<16x16xf32>
    %225 = math.log1p %224 : vector<16x16xf32>
    %226 = arith.addf %220, %225 : vector<16x16xf32>
    %227 = arith.negf %204 : vector<16x16xf32>
    %228 = math.exp %227 : vector<16x16xf32>
    %cst_81 = arith.constant 1.000000e+00 : f32
    %229 = vector.broadcast %cst_81 : f32 to vector<16x16xf32>
    %230 = arith.addf %229, %228 : vector<16x16xf32>
    %231 = arith.divf %229, %230 : vector<16x16xf32>
    %232 = vector.shape_cast %216 : vector<16x16xf32> to vector<1x16x16xf32>
    %cst_82 = arith.constant dense<0.000000e+00> : vector<1xf32>
    %233 = vector.multi_reduction <add>, %232, %cst_82 [1, 2] : vector<1x16x16xf32> to vector<1xf32>
    %234 = vector.shape_cast %233 : vector<1xf32> to vector<1x1x1xf32>
    %235 = vector.extract %234[0, 0, 0] : f32 from vector<1x1x1xf32>
    %236 = vector.broadcast %235 : f32 to vector<1x1xf32>
    %237 = arith.mulf %216, %226 : vector<16x16xf32>
    %238 = vector.shape_cast %237 : vector<16x16xf32> to vector<1x16x16xf32>
    %cst_83 = arith.constant dense<0.000000e+00> : vector<1xf32>
    %239 = vector.multi_reduction <add>, %238, %cst_83 [1, 2] : vector<1x16x16xf32> to vector<1xf32>
    %240 = vector.shape_cast %239 : vector<1xf32> to vector<1x1x1xf32>
    %241 = vector.extract %240[0, 0, 0] : f32 from vector<1x1x1xf32>
    %242 = vector.broadcast %241 : f32 to vector<1x1xf32>
    %243 = arith.mulf %231, %206 : vector<16x16xf32>
    %244 = arith.mulf %243, %216 : vector<16x16xf32>
    %245 = vector.shape_cast %244 : vector<16x16xf32> to vector<1x16x16xf32>
    %cst_84 = arith.constant dense<0.000000e+00> : vector<1xf32>
    %246 = vector.multi_reduction <add>, %245, %cst_84 [1, 2] : vector<1x16x16xf32> to vector<1xf32>
    %247 = vector.shape_cast %246 : vector<1xf32> to vector<1x1x1xf32>
    %248 = vector.extract %247[0, 0, 0] : f32 from vector<1x1x1xf32>
    %249 = vector.broadcast %248 : f32 to vector<1x1xf32>
    %250 = arith.addf %231, %206 : vector<16x16xf32>
    %251 = arith.mulf %250, %216 : vector<16x16xf32>
    %252 = vector.shape_cast %251 : vector<16x16xf32> to vector<1x16x16xf32>
    %cst_85 = arith.constant dense<0.000000e+00> : vector<1xf32>
    %253 = vector.multi_reduction <add>, %252, %cst_85 [1, 2] : vector<1x16x16xf32> to vector<1xf32>
    %254 = vector.shape_cast %253 : vector<1xf32> to vector<1x1x1xf32>
    %255 = vector.extract %254[0, 0, 0] : f32 from vector<1x1x1xf32>
    %256 = vector.broadcast %255 : f32 to vector<1x1xf32>
    %257 = arith.divf %242, %236 : vector<1x1xf32>
    %cst_86 = arith.constant 1.000000e+00 : f32
    %258 = vector.broadcast %cst_86 : f32 to vector<1x1xf32>
    %259 = arith.addf %249, %258 : vector<1x1xf32>
    %260 = arith.subf %256, %249 : vector<1x1xf32>
    %cst_87 = arith.constant 1.000000e+00 : f32
    %261 = vector.broadcast %cst_87 : f32 to vector<1x1xf32>
    %262 = arith.addf %260, %261 : vector<1x1xf32>
    %263 = arith.divf %259, %262 : vector<1x1xf32>
    %cst_88 = arith.constant 1.000000e+00 : f32
    %264 = vector.broadcast %cst_88 : f32 to vector<1x1xf32>
    %265 = arith.subf %264, %263 : vector<1x1xf32>
    %266 = arith.addf %257, %265 : vector<1x1xf32>
    %267 = vector.shape_cast %266 : vector<1x1xf32> to vector<1x1xf32>
    %268 = vector.broadcast %267 : vector<1x1xf32> to vector<1x128xf32>
    %c3_89 = arith.constant 3 : index
    %c0_90 = arith.constant 0 : index
    %269 = vector.load %arg5[%c3_89, %c0_90] : memref<8x128xf32, #tpu.memory_space<vmem>>, vector<1x128xf32>
    tpu.vector_store %arg5[%c3_89, %c0_90], %268 {strides = array<i32>} : memref<8x128xf32, #tpu.memory_space<vmem>>, vector<1x128xf32>,
    %c4 = arith.constant 4 : index
    %c0_91 = arith.constant 0 : index
    %c0_92 = arith.constant 0 : index
    %270 = vector.load %arg1[%c4, %c0_91, %c0_92] : memref<8x16x16xf32, #tpu.memory_space<vmem>>, vector<1x16x16xf32>
    %271 = vector.shape_cast %270 : vector<1x16x16xf32> to vector<16x16xf32>
    %c4_93 = arith.constant 4 : index
    %c0_94 = arith.constant 0 : index
    %c0_95 = arith.constant 0 : index
    %272 = vector.load %arg2[%c4_93, %c0_94, %c0_95] : memref<8x16x16xf32, #tpu.memory_space<vmem>>, vector<1x16x16xf32>
    %273 = vector.shape_cast %272 : vector<1x16x16xf32> to vector<16x16xf32>
    %cst_96 = arith.constant dense<0.000000e+00> : vector<16x16xf32>
    %274 = tpu.matmul %0, %273, %cst_96 {dimension_numbers = #tpu.dot_dimension_numbers<[1], [0], [0], [1], [0, 0, 1, 1], [], []>} : vector<16x16xf32>, vector<16x16xf32>, vector<16x16xf32> -> vector<16x16xf32>
    %cst_97 = arith.constant dense<0.000000e+00> : vector<16x16xf32>
    %275 = tpu.matmul %274, %1, %cst_97 {dimension_numbers = #tpu.dot_dimension_numbers<[1], [0], [0], [1], [0, 0, 1, 1], [], []>} : vector<16x16xf32>, vector<16x16xf32>, vector<16x16xf32> -> vector<16x16xf32>
    %cst_98 = arith.constant 0.00104058278 : f32
    %276 = vector.broadcast %cst_98 : f32 to vector<16x16xf32>
    %277 = arith.mulf %275, %276 : vector<16x16xf32>
    %278 = arith.subf %277, %273 : vector<16x16xf32>
    %279 = math.absf %278 : vector<16x16xf32>
    %cst_99 = arith.constant 5.000000e+00 : f32
    %280 = vector.broadcast %cst_99 : f32 to vector<16x16xf32>
    %281 = arith.mulf %280, %279 : vector<16x16xf32>
    %cst_100 = arith.constant 1.000000e+00 : f32
    %282 = vector.broadcast %cst_100 : f32 to vector<16x16xf32>
    %283 = arith.addf %282, %281 : vector<16x16xf32>
    %cst_101 = arith.constant 0.000000e+00 : f32
    %284 = vector.broadcast %cst_101 : f32 to vector<16x16xf32>
    %285 = arith.maximumf %271, %284 : vector<16x16xf32>
    %286 = arith.mulf %271, %273 : vector<16x16xf32>
    %287 = arith.subf %285, %286 : vector<16x16xf32>
    %288 = math.absf %271 : vector<16x16xf32>
    %cst_102 = arith.constant 0.000000e+00 : f32
    %289 = vector.broadcast %cst_102 : f32 to vector<16x16xf32>
    %290 = arith.subf %289, %288 : vector<16x16xf32>
    %291 = math.exp %290 : vector<16x16xf32>
    %292 = math.log1p %291 : vector<16x16xf32>
    %293 = arith.addf %287, %292 : vector<16x16xf32>
    %294 = arith.negf %271 : vector<16x16xf32>
    %295 = math.exp %294 : vector<16x16xf32>
    %cst_103 = arith.constant 1.000000e+00 : f32
    %296 = vector.broadcast %cst_103 : f32 to vector<16x16xf32>
    %297 = arith.addf %296, %295 : vector<16x16xf32>
    %298 = arith.divf %296, %297 : vector<16x16xf32>
    %299 = vector.shape_cast %283 : vector<16x16xf32> to vector<1x16x16xf32>
    %cst_104 = arith.constant dense<0.000000e+00> : vector<1xf32>
    %300 = vector.multi_reduction <add>, %299, %cst_104 [1, 2] : vector<1x16x16xf32> to vector<1xf32>
    %301 = vector.shape_cast %300 : vector<1xf32> to vector<1x1x1xf32>
    %302 = vector.extract %301[0, 0, 0] : f32 from vector<1x1x1xf32>
    %303 = vector.broadcast %302 : f32 to vector<1x1xf32>
    %304 = arith.mulf %283, %293 : vector<16x16xf32>
    %305 = vector.shape_cast %304 : vector<16x16xf32> to vector<1x16x16xf32>
    %cst_105 = arith.constant dense<0.000000e+00> : vector<1xf32>
    %306 = vector.multi_reduction <add>, %305, %cst_105 [1, 2] : vector<1x16x16xf32> to vector<1xf32>
    %307 = vector.shape_cast %306 : vector<1xf32> to vector<1x1x1xf32>
    %308 = vector.extract %307[0, 0, 0] : f32 from vector<1x1x1xf32>
    %309 = vector.broadcast %308 : f32 to vector<1x1xf32>
    %310 = arith.mulf %298, %273 : vector<16x16xf32>
    %311 = arith.mulf %310, %283 : vector<16x16xf32>
    %312 = vector.shape_cast %311 : vector<16x16xf32> to vector<1x16x16xf32>
    %cst_106 = arith.constant dense<0.000000e+00> : vector<1xf32>
    %313 = vector.multi_reduction <add>, %312, %cst_106 [1, 2] : vector<1x16x16xf32> to vector<1xf32>
    %314 = vector.shape_cast %313 : vector<1xf32> to vector<1x1x1xf32>
    %315 = vector.extract %314[0, 0, 0] : f32 from vector<1x1x1xf32>
    %316 = vector.broadcast %315 : f32 to vector<1x1xf32>
    %317 = arith.addf %298, %273 : vector<16x16xf32>
    %318 = arith.mulf %317, %283 : vector<16x16xf32>
    %319 = vector.shape_cast %318 : vector<16x16xf32> to vector<1x16x16xf32>
    %cst_107 = arith.constant dense<0.000000e+00> : vector<1xf32>
    %320 = vector.multi_reduction <add>, %319, %cst_107 [1, 2] : vector<1x16x16xf32> to vector<1xf32>
    %321 = vector.shape_cast %320 : vector<1xf32> to vector<1x1x1xf32>
    %322 = vector.extract %321[0, 0, 0] : f32 from vector<1x1x1xf32>
    %323 = vector.broadcast %322 : f32 to vector<1x1xf32>
    %324 = arith.divf %309, %303 : vector<1x1xf32>
    %cst_108 = arith.constant 1.000000e+00 : f32
    %325 = vector.broadcast %cst_108 : f32 to vector<1x1xf32>
    %326 = arith.addf %316, %325 : vector<1x1xf32>
    %327 = arith.subf %323, %316 : vector<1x1xf32>
    %cst_109 = arith.constant 1.000000e+00 : f32
    %328 = vector.broadcast %cst_109 : f32 to vector<1x1xf32>
    %329 = arith.addf %327, %328 : vector<1x1xf32>
    %330 = arith.divf %326, %329 : vector<1x1xf32>
    %cst_110 = arith.constant 1.000000e+00 : f32
    %331 = vector.broadcast %cst_110 : f32 to vector<1x1xf32>
    %332 = arith.subf %331, %330 : vector<1x1xf32>
    %333 = arith.addf %324, %332 : vector<1x1xf32>
    %334 = vector.shape_cast %333 : vector<1x1xf32> to vector<1x1xf32>
    %335 = vector.broadcast %334 : vector<1x1xf32> to vector<1x128xf32>
    %c4_111 = arith.constant 4 : index
    %c0_112 = arith.constant 0 : index
    %336 = vector.load %arg5[%c4_111, %c0_112] : memref<8x128xf32, #tpu.memory_space<vmem>>, vector<1x128xf32>
    tpu.vector_store %arg5[%c4_111, %c0_112], %335 {strides = array<i32>} : memref<8x128xf32, #tpu.memory_space<vmem>>, vector<1x128xf32>,
    %c5 = arith.constant 5 : index
    %c0_113 = arith.constant 0 : index
    %c0_114 = arith.constant 0 : index
    %337 = vector.load %arg1[%c5, %c0_113, %c0_114] : memref<8x16x16xf32, #tpu.memory_space<vmem>>, vector<1x16x16xf32>
    %338 = vector.shape_cast %337 : vector<1x16x16xf32> to vector<16x16xf32>
    %c5_115 = arith.constant 5 : index
    %c0_116 = arith.constant 0 : index
    %c0_117 = arith.constant 0 : index
    %339 = vector.load %arg2[%c5_115, %c0_116, %c0_117] : memref<8x16x16xf32, #tpu.memory_space<vmem>>, vector<1x16x16xf32>
    %340 = vector.shape_cast %339 : vector<1x16x16xf32> to vector<16x16xf32>
    %cst_118 = arith.constant dense<0.000000e+00> : vector<16x16xf32>
    %341 = tpu.matmul %0, %340, %cst_118 {dimension_numbers = #tpu.dot_dimension_numbers<[1], [0], [0], [1], [0, 0, 1, 1], [], []>} : vector<16x16xf32>, vector<16x16xf32>, vector<16x16xf32> -> vector<16x16xf32>
    %cst_119 = arith.constant dense<0.000000e+00> : vector<16x16xf32>
    %342 = tpu.matmul %341, %1, %cst_119 {dimension_numbers = #tpu.dot_dimension_numbers<[1], [0], [0], [1], [0, 0, 1, 1], [], []>} : vector<16x16xf32>, vector<16x16xf32>, vector<16x16xf32> -> vector<16x16xf32>
    %cst_120 = arith.constant 0.00104058278 : f32
    %343 = vector.broadcast %cst_120 : f32 to vector<16x16xf32>
    %344 = arith.mulf %342, %343 : vector<16x16xf32>
    %345 = arith.subf %344, %340 : vector<16x16xf32>
    %346 = math.absf %345 : vector<16x16xf32>
    %cst_121 = arith.constant 5.000000e+00 : f32
    %347 = vector.broadcast %cst_121 : f32 to vector<16x16xf32>
    %348 = arith.mulf %347, %346 : vector<16x16xf32>
    %cst_122 = arith.constant 1.000000e+00 : f32
    %349 = vector.broadcast %cst_122 : f32 to vector<16x16xf32>
    %350 = arith.addf %349, %348 : vector<16x16xf32>
    %cst_123 = arith.constant 0.000000e+00 : f32
    %351 = vector.broadcast %cst_123 : f32 to vector<16x16xf32>
    %352 = arith.maximumf %338, %351 : vector<16x16xf32>
    %353 = arith.mulf %338, %340 : vector<16x16xf32>
    %354 = arith.subf %352, %353 : vector<16x16xf32>
    %355 = math.absf %338 : vector<16x16xf32>
    %cst_124 = arith.constant 0.000000e+00 : f32
    %356 = vector.broadcast %cst_124 : f32 to vector<16x16xf32>
    %357 = arith.subf %356, %355 : vector<16x16xf32>
    %358 = math.exp %357 : vector<16x16xf32>
    %359 = math.log1p %358 : vector<16x16xf32>
    %360 = arith.addf %354, %359 : vector<16x16xf32>
    %361 = arith.negf %338 : vector<16x16xf32>
    %362 = math.exp %361 : vector<16x16xf32>
    %cst_125 = arith.constant 1.000000e+00 : f32
    %363 = vector.broadcast %cst_125 : f32 to vector<16x16xf32>
    %364 = arith.addf %363, %362 : vector<16x16xf32>
    %365 = arith.divf %363, %364 : vector<16x16xf32>
    %366 = vector.shape_cast %350 : vector<16x16xf32> to vector<1x16x16xf32>
    %cst_126 = arith.constant dense<0.000000e+00> : vector<1xf32>
    %367 = vector.multi_reduction <add>, %366, %cst_126 [1, 2] : vector<1x16x16xf32> to vector<1xf32>
    %368 = vector.shape_cast %367 : vector<1xf32> to vector<1x1x1xf32>
    %369 = vector.extract %368[0, 0, 0] : f32 from vector<1x1x1xf32>
    %370 = vector.broadcast %369 : f32 to vector<1x1xf32>
    %371 = arith.mulf %350, %360 : vector<16x16xf32>
    %372 = vector.shape_cast %371 : vector<16x16xf32> to vector<1x16x16xf32>
    %cst_127 = arith.constant dense<0.000000e+00> : vector<1xf32>
    %373 = vector.multi_reduction <add>, %372, %cst_127 [1, 2] : vector<1x16x16xf32> to vector<1xf32>
    %374 = vector.shape_cast %373 : vector<1xf32> to vector<1x1x1xf32>
    %375 = vector.extract %374[0, 0, 0] : f32 from vector<1x1x1xf32>
    %376 = vector.broadcast %375 : f32 to vector<1x1xf32>
    %377 = arith.mulf %365, %340 : vector<16x16xf32>
    %378 = arith.mulf %377, %350 : vector<16x16xf32>
    %379 = vector.shape_cast %378 : vector<16x16xf32> to vector<1x16x16xf32>
    %cst_128 = arith.constant dense<0.000000e+00> : vector<1xf32>
    %380 = vector.multi_reduction <add>, %379, %cst_128 [1, 2] : vector<1x16x16xf32> to vector<1xf32>
    %381 = vector.shape_cast %380 : vector<1xf32> to vector<1x1x1xf32>
    %382 = vector.extract %381[0, 0, 0] : f32 from vector<1x1x1xf32>
    %383 = vector.broadcast %382 : f32 to vector<1x1xf32>
    %384 = arith.addf %365, %340 : vector<16x16xf32>
    %385 = arith.mulf %384, %350 : vector<16x16xf32>
    %386 = vector.shape_cast %385 : vector<16x16xf32> to vector<1x16x16xf32>
    %cst_129 = arith.constant dense<0.000000e+00> : vector<1xf32>
    %387 = vector.multi_reduction <add>, %386, %cst_129 [1, 2] : vector<1x16x16xf32> to vector<1xf32>
    %388 = vector.shape_cast %387 : vector<1xf32> to vector<1x1x1xf32>
    %389 = vector.extract %388[0, 0, 0] : f32 from vector<1x1x1xf32>
    %390 = vector.broadcast %389 : f32 to vector<1x1xf32>
    %391 = arith.divf %376, %370 : vector<1x1xf32>
    %cst_130 = arith.constant 1.000000e+00 : f32
    %392 = vector.broadcast %cst_130 : f32 to vector<1x1xf32>
    %393 = arith.addf %383, %392 : vector<1x1xf32>
    %394 = arith.subf %390, %383 : vector<1x1xf32>
    %cst_131 = arith.constant 1.000000e+00 : f32
    %395 = vector.broadcast %cst_131 : f32 to vector<1x1xf32>
    %396 = arith.addf %394, %395 : vector<1x1xf32>
    %397 = arith.divf %393, %396 : vector<1x1xf32>
    %cst_132 = arith.constant 1.000000e+00 : f32
    %398 = vector.broadcast %cst_132 : f32 to vector<1x1xf32>
    %399 = arith.subf %398, %397 : vector<1x1xf32>
    %400 = arith.addf %391, %399 : vector<1x1xf32>
    %401 = vector.shape_cast %400 : vector<1x1xf32> to vector<1x1xf32>
    %402 = vector.broadcast %401 : vector<1x1xf32> to vector<1x128xf32>
    %c5_133 = arith.constant 5 : index
    %c0_134 = arith.constant 0 : index
    %403 = vector.load %arg5[%c5_133, %c0_134] : memref<8x128xf32, #tpu.memory_space<vmem>>, vector<1x128xf32>
    tpu.vector_store %arg5[%c5_133, %c0_134], %402 {strides = array<i32>} : memref<8x128xf32, #tpu.memory_space<vmem>>, vector<1x128xf32>,
    %c6 = arith.constant 6 : index
    %c0_135 = arith.constant 0 : index
    %c0_136 = arith.constant 0 : index
    %404 = vector.load %arg1[%c6, %c0_135, %c0_136] : memref<8x16x16xf32, #tpu.memory_space<vmem>>, vector<1x16x16xf32>
    %405 = vector.shape_cast %404 : vector<1x16x16xf32> to vector<16x16xf32>
    %c6_137 = arith.constant 6 : index
    %c0_138 = arith.constant 0 : index
    %c0_139 = arith.constant 0 : index
    %406 = vector.load %arg2[%c6_137, %c0_138, %c0_139] : memref<8x16x16xf32, #tpu.memory_space<vmem>>, vector<1x16x16xf32>
    %407 = vector.shape_cast %406 : vector<1x16x16xf32> to vector<16x16xf32>
    %cst_140 = arith.constant dense<0.000000e+00> : vector<16x16xf32>
    %408 = tpu.matmul %0, %407, %cst_140 {dimension_numbers = #tpu.dot_dimension_numbers<[1], [0], [0], [1], [0, 0, 1, 1], [], []>} : vector<16x16xf32>, vector<16x16xf32>, vector<16x16xf32> -> vector<16x16xf32>
    %cst_141 = arith.constant dense<0.000000e+00> : vector<16x16xf32>
    %409 = tpu.matmul %408, %1, %cst_141 {dimension_numbers = #tpu.dot_dimension_numbers<[1], [0], [0], [1], [0, 0, 1, 1], [], []>} : vector<16x16xf32>, vector<16x16xf32>, vector<16x16xf32> -> vector<16x16xf32>
    %cst_142 = arith.constant 0.00104058278 : f32
    %410 = vector.broadcast %cst_142 : f32 to vector<16x16xf32>
    %411 = arith.mulf %409, %410 : vector<16x16xf32>
    %412 = arith.subf %411, %407 : vector<16x16xf32>
    %413 = math.absf %412 : vector<16x16xf32>
    %cst_143 = arith.constant 5.000000e+00 : f32
    %414 = vector.broadcast %cst_143 : f32 to vector<16x16xf32>
    %415 = arith.mulf %414, %413 : vector<16x16xf32>
    %cst_144 = arith.constant 1.000000e+00 : f32
    %416 = vector.broadcast %cst_144 : f32 to vector<16x16xf32>
    %417 = arith.addf %416, %415 : vector<16x16xf32>
    %cst_145 = arith.constant 0.000000e+00 : f32
    %418 = vector.broadcast %cst_145 : f32 to vector<16x16xf32>
    %419 = arith.maximumf %405, %418 : vector<16x16xf32>
    %420 = arith.mulf %405, %407 : vector<16x16xf32>
    %421 = arith.subf %419, %420 : vector<16x16xf32>
    %422 = math.absf %405 : vector<16x16xf32>
    %cst_146 = arith.constant 0.000000e+00 : f32
    %423 = vector.broadcast %cst_146 : f32 to vector<16x16xf32>
    %424 = arith.subf %423, %422 : vector<16x16xf32>
    %425 = math.exp %424 : vector<16x16xf32>
    %426 = math.log1p %425 : vector<16x16xf32>
    %427 = arith.addf %421, %426 : vector<16x16xf32>
    %428 = arith.negf %405 : vector<16x16xf32>
    %429 = math.exp %428 : vector<16x16xf32>
    %cst_147 = arith.constant 1.000000e+00 : f32
    %430 = vector.broadcast %cst_147 : f32 to vector<16x16xf32>
    %431 = arith.addf %430, %429 : vector<16x16xf32>
    %432 = arith.divf %430, %431 : vector<16x16xf32>
    %433 = vector.shape_cast %417 : vector<16x16xf32> to vector<1x16x16xf32>
    %cst_148 = arith.constant dense<0.000000e+00> : vector<1xf32>
    %434 = vector.multi_reduction <add>, %433, %cst_148 [1, 2] : vector<1x16x16xf32> to vector<1xf32>
    %435 = vector.shape_cast %434 : vector<1xf32> to vector<1x1x1xf32>
    %436 = vector.extract %435[0, 0, 0] : f32 from vector<1x1x1xf32>
    %437 = vector.broadcast %436 : f32 to vector<1x1xf32>
    %438 = arith.mulf %417, %427 : vector<16x16xf32>
    %439 = vector.shape_cast %438 : vector<16x16xf32> to vector<1x16x16xf32>
    %cst_149 = arith.constant dense<0.000000e+00> : vector<1xf32>
    %440 = vector.multi_reduction <add>, %439, %cst_149 [1, 2] : vector<1x16x16xf32> to vector<1xf32>
    %441 = vector.shape_cast %440 : vector<1xf32> to vector<1x1x1xf32>
    %442 = vector.extract %441[0, 0, 0] : f32 from vector<1x1x1xf32>
    %443 = vector.broadcast %442 : f32 to vector<1x1xf32>
    %444 = arith.mulf %432, %407 : vector<16x16xf32>
    %445 = arith.mulf %444, %417 : vector<16x16xf32>
    %446 = vector.shape_cast %445 : vector<16x16xf32> to vector<1x16x16xf32>
    %cst_150 = arith.constant dense<0.000000e+00> : vector<1xf32>
    %447 = vector.multi_reduction <add>, %446, %cst_150 [1, 2] : vector<1x16x16xf32> to vector<1xf32>
    %448 = vector.shape_cast %447 : vector<1xf32> to vector<1x1x1xf32>
    %449 = vector.extract %448[0, 0, 0] : f32 from vector<1x1x1xf32>
    %450 = vector.broadcast %449 : f32 to vector<1x1xf32>
    %451 = arith.addf %432, %407 : vector<16x16xf32>
    %452 = arith.mulf %451, %417 : vector<16x16xf32>
    %453 = vector.shape_cast %452 : vector<16x16xf32> to vector<1x16x16xf32>
    %cst_151 = arith.constant dense<0.000000e+00> : vector<1xf32>
    %454 = vector.multi_reduction <add>, %453, %cst_151 [1, 2] : vector<1x16x16xf32> to vector<1xf32>
    %455 = vector.shape_cast %454 : vector<1xf32> to vector<1x1x1xf32>
    %456 = vector.extract %455[0, 0, 0] : f32 from vector<1x1x1xf32>
    %457 = vector.broadcast %456 : f32 to vector<1x1xf32>
    %458 = arith.divf %443, %437 : vector<1x1xf32>
    %cst_152 = arith.constant 1.000000e+00 : f32
    %459 = vector.broadcast %cst_152 : f32 to vector<1x1xf32>
    %460 = arith.addf %450, %459 : vector<1x1xf32>
    %461 = arith.subf %457, %450 : vector<1x1xf32>
    %cst_153 = arith.constant 1.000000e+00 : f32
    %462 = vector.broadcast %cst_153 : f32 to vector<1x1xf32>
    %463 = arith.addf %461, %462 : vector<1x1xf32>
    %464 = arith.divf %460, %463 : vector<1x1xf32>
    %cst_154 = arith.constant 1.000000e+00 : f32
    %465 = vector.broadcast %cst_154 : f32 to vector<1x1xf32>
    %466 = arith.subf %465, %464 : vector<1x1xf32>
    %467 = arith.addf %458, %466 : vector<1x1xf32>
    %468 = vector.shape_cast %467 : vector<1x1xf32> to vector<1x1xf32>
    %469 = vector.broadcast %468 : vector<1x1xf32> to vector<1x128xf32>
    %c6_155 = arith.constant 6 : index
    %c0_156 = arith.constant 0 : index
    %470 = vector.load %arg5[%c6_155, %c0_156] : memref<8x128xf32, #tpu.memory_space<vmem>>, vector<1x128xf32>
    tpu.vector_store %arg5[%c6_155, %c0_156], %469 {strides = array<i32>} : memref<8x128xf32, #tpu.memory_space<vmem>>, vector<1x128xf32>,
    %c7 = arith.constant 7 : index
    %c0_157 = arith.constant 0 : index
    %c0_158 = arith.constant 0 : index
    %471 = vector.load %arg1[%c7, %c0_157, %c0_158] : memref<8x16x16xf32, #tpu.memory_space<vmem>>, vector<1x16x16xf32>
    %472 = vector.shape_cast %471 : vector<1x16x16xf32> to vector<16x16xf32>
    %c7_159 = arith.constant 7 : index
    %c0_160 = arith.constant 0 : index
    %c0_161 = arith.constant 0 : index
    %473 = vector.load %arg2[%c7_159, %c0_160, %c0_161] : memref<8x16x16xf32, #tpu.memory_space<vmem>>, vector<1x16x16xf32>
    %474 = vector.shape_cast %473 : vector<1x16x16xf32> to vector<16x16xf32>
    %cst_162 = arith.constant dense<0.000000e+00> : vector<16x16xf32>
    %475 = tpu.matmul %0, %474, %cst_162 {dimension_numbers = #tpu.dot_dimension_numbers<[1], [0], [0], [1], [0, 0, 1, 1], [], []>} : vector<16x16xf32>, vector<16x16xf32>, vector<16x16xf32> -> vector<16x16xf32>
    %cst_163 = arith.constant dense<0.000000e+00> : vector<16x16xf32>
    %476 = tpu.matmul %475, %1, %cst_163 {dimension_numbers = #tpu.dot_dimension_numbers<[1], [0], [0], [1], [0, 0, 1, 1], [], []>} : vector<16x16xf32>, vector<16x16xf32>, vector<16x16xf32> -> vector<16x16xf32>
    %cst_164 = arith.constant 0.00104058278 : f32
    %477 = vector.broadcast %cst_164 : f32 to vector<16x16xf32>
    %478 = arith.mulf %476, %477 : vector<16x16xf32>
    %479 = arith.subf %478, %474 : vector<16x16xf32>
    %480 = math.absf %479 : vector<16x16xf32>
    %cst_165 = arith.constant 5.000000e+00 : f32
    %481 = vector.broadcast %cst_165 : f32 to vector<16x16xf32>
    %482 = arith.mulf %481, %480 : vector<16x16xf32>
    %cst_166 = arith.constant 1.000000e+00 : f32
    %483 = vector.broadcast %cst_166 : f32 to vector<16x16xf32>
    %484 = arith.addf %483, %482 : vector<16x16xf32>
    %cst_167 = arith.constant 0.000000e+00 : f32
    %485 = vector.broadcast %cst_167 : f32 to vector<16x16xf32>
    %486 = arith.maximumf %472, %485 : vector<16x16xf32>
    %487 = arith.mulf %472, %474 : vector<16x16xf32>
    %488 = arith.subf %486, %487 : vector<16x16xf32>
    %489 = math.absf %472 : vector<16x16xf32>
    %cst_168 = arith.constant 0.000000e+00 : f32
    %490 = vector.broadcast %cst_168 : f32 to vector<16x16xf32>
    %491 = arith.subf %490, %489 : vector<16x16xf32>
    %492 = math.exp %491 : vector<16x16xf32>
    %493 = math.log1p %492 : vector<16x16xf32>
    %494 = arith.addf %488, %493 : vector<16x16xf32>
    %495 = arith.negf %472 : vector<16x16xf32>
    %496 = math.exp %495 : vector<16x16xf32>
    %cst_169 = arith.constant 1.000000e+00 : f32
    %497 = vector.broadcast %cst_169 : f32 to vector<16x16xf32>
    %498 = arith.addf %497, %496 : vector<16x16xf32>
    %499 = arith.divf %497, %498 : vector<16x16xf32>
    %500 = vector.shape_cast %484 : vector<16x16xf32> to vector<1x16x16xf32>
    %cst_170 = arith.constant dense<0.000000e+00> : vector<1xf32>
    %501 = vector.multi_reduction <add>, %500, %cst_170 [1, 2] : vector<1x16x16xf32> to vector<1xf32>
    %502 = vector.shape_cast %501 : vector<1xf32> to vector<1x1x1xf32>
    %503 = vector.extract %502[0, 0, 0] : f32 from vector<1x1x1xf32>
    %504 = vector.broadcast %503 : f32 to vector<1x1xf32>
    %505 = arith.mulf %484, %494 : vector<16x16xf32>
    %506 = vector.shape_cast %505 : vector<16x16xf32> to vector<1x16x16xf32>
    %cst_171 = arith.constant dense<0.000000e+00> : vector<1xf32>
    %507 = vector.multi_reduction <add>, %506, %cst_171 [1, 2] : vector<1x16x16xf32> to vector<1xf32>
    %508 = vector.shape_cast %507 : vector<1xf32> to vector<1x1x1xf32>
    %509 = vector.extract %508[0, 0, 0] : f32 from vector<1x1x1xf32>
    %510 = vector.broadcast %509 : f32 to vector<1x1xf32>
    %511 = arith.mulf %499, %474 : vector<16x16xf32>
    %512 = arith.mulf %511, %484 : vector<16x16xf32>
    %513 = vector.shape_cast %512 : vector<16x16xf32> to vector<1x16x16xf32>
    %cst_172 = arith.constant dense<0.000000e+00> : vector<1xf32>
    %514 = vector.multi_reduction <add>, %513, %cst_172 [1, 2] : vector<1x16x16xf32> to vector<1xf32>
    %515 = vector.shape_cast %514 : vector<1xf32> to vector<1x1x1xf32>
    %516 = vector.extract %515[0, 0, 0] : f32 from vector<1x1x1xf32>
    %517 = vector.broadcast %516 : f32 to vector<1x1xf32>
    %518 = arith.addf %499, %474 : vector<16x16xf32>
    %519 = arith.mulf %518, %484 : vector<16x16xf32>
    %520 = vector.shape_cast %519 : vector<16x16xf32> to vector<1x16x16xf32>
    %cst_173 = arith.constant dense<0.000000e+00> : vector<1xf32>
    %521 = vector.multi_reduction <add>, %520, %cst_173 [1, 2] : vector<1x16x16xf32> to vector<1xf32>
    %522 = vector.shape_cast %521 : vector<1xf32> to vector<1x1x1xf32>
    %523 = vector.extract %522[0, 0, 0] : f32 from vector<1x1x1xf32>
    %524 = vector.broadcast %523 : f32 to vector<1x1xf32>
    %525 = arith.divf %510, %504 : vector<1x1xf32>
    %cst_174 = arith.constant 1.000000e+00 : f32
    %526 = vector.broadcast %cst_174 : f32 to vector<1x1xf32>
    %527 = arith.addf %517, %526 : vector<1x1xf32>
    %528 = arith.subf %524, %517 : vector<1x1xf32>
    %cst_175 = arith.constant 1.000000e+00 : f32
    %529 = vector.broadcast %cst_175 : f32 to vector<1x1xf32>
    %530 = arith.addf %528, %529 : vector<1x1xf32>
    %531 = arith.divf %527, %530 : vector<1x1xf32>
    %cst_176 = arith.constant 1.000000e+00 : f32
    %532 = vector.broadcast %cst_176 : f32 to vector<1x1xf32>
    %533 = arith.subf %532, %531 : vector<1x1xf32>
    %534 = arith.addf %525, %533 : vector<1x1xf32>
    %535 = vector.shape_cast %534 : vector<1x1xf32> to vector<1x1xf32>
    %536 = vector.broadcast %535 : vector<1x1xf32> to vector<1x128xf32>
    %c7_177 = arith.constant 7 : index
    %c0_178 = arith.constant 0 : index
    %537 = vector.load %arg5[%c7_177, %c0_178] : memref<8x128xf32, #tpu.memory_space<vmem>>, vector<1x128xf32>
    tpu.vector_store %arg5[%c7_177, %c0_178], %536 {strides = array<i32>} : memref<8x128xf32, #tpu.memory_space<vmem>>, vector<1x128xf32>,
    return
  }
  func.func @transform_0(%arg0: i32) -> (i32, i32, i32) {
    %c0_i32 = arith.constant 0 : i32
    %c0_i32_0 = arith.constant 0 : i32
    %c0_i32_1 = arith.constant 0 : i32
    return %arg0, %c0_i32, %c0_i32_0 : i32, i32, i32
  }
  func.func @transform_1(%arg0: i32) -> (i32, i32, i32) {
    %c0_i32 = arith.constant 0 : i32
    %c0_i32_0 = arith.constant 0 : i32
    %c0_i32_1 = arith.constant 0 : i32
    return %arg0, %c0_i32, %c0_i32_0 : i32, i32, i32
  }
  func.func @transform_2(%arg0: i32) -> (i32, i32) {
    %c0_i32 = arith.constant 0 : i32
    %c0_i32_0 = arith.constant 0 : i32
    %c0_i32_1 = arith.constant 0 : i32
    return %c0_i32, %c0_i32_0 : i32, i32
  }
  func.func @transform_3(%arg0: i32) -> (i32, i32) {
    %c0_i32 = arith.constant 0 : i32
    %c0_i32_0 = arith.constant 0 : i32
    %c0_i32_1 = arith.constant 0 : i32
    return %c0_i32, %c0_i32_0 : i32, i32
  }
  func.func @transform_4(%arg0: i32) -> (i32, i32) {
    %c0_i32 = arith.constant 0 : i32
    %c0_i32_0 = arith.constant 0 : i32
    return %arg0, %c0_i32 : i32, i32
  }
}

</mosaic_0001>

<bundles_post_ra>
// kernel: tpu_custom_call.1
= control target key start
LH: loop header
LB: loop body
LE: loop exit
PB: predicated region body
PF: predicated region fallthrough
CT: control target
= control target key end

     0   :  { %9 = vsyncpa [#allocation3], 0  ;;  %s3953_s0 = inlined_call_operand.hbm [shape: f32[8,16,16], index: 0, kind: input, shape index: {}]   ;;  %s3954_s1 = inlined_call_operand.hbm [shape: f32[8,16,16], index: 1, kind: input, shape index: {}]   ;;  %s3955_s2 = inlined_call_operand.hbm [shape: f32[16,16], index: 2, kind: input, shape index: {}]   ;;  %s3956_s3 = inlined_call_operand.hbm [shape: f32[16,16], index: 3, kind: input, shape index: {}]   ;;  %s3957_s4 = inlined_call_operand.hbm [shape: f32[8,128], index: 4, kind: output, shape index: {}]  }
   0x1   :  { %10 = vsyncpa [#allocation6], 0 }
   0x2   :  { %11 = vsyncpa [#allocation9], 0 }
   0x3   :  { %12 = vsyncpa [#allocation4], 0  ;;  %s3072_s15 = smov [#allocation5]   ;;  %s3073_s17 = smov [#allocation2]  }
   0x4   :  { %s30_s16 = sshll.u32 %s3072_s15, 4  ;;  %s18_s18 = sshll.u32 %s3073_s17, 4  ;;  %s31_s16 = int_to_ptr.vmem [resolvable:$true] %s30_s16  ;;  %s3104_s18 = int_to_ptr.vmem [resolvable:$true] %s18_s18 }
   0x5   :  { %s2954_s21 = scalar_lea.hbm %s3954_s1, 2048 }
   0x6   :  { %p2955_p0 = scmp.ne.s32.totalorder %s3954_s1, %s2954_s21  ;;  %p2958_p1 = scmp.lt.u32.totalorder %s2954_s21, %s3954_s1 }
   0x8   :  { %p2960_p2 = pnand %p2958_p1, %p2955_p0 }
   0xa   :  { %2963 = shalt.err (!%p2960_p2)
}
   0xb   :  { %s2964_s26 = scalar_lea.vmem %s31_s16, 2048  ;;  %p2969_p4 = scmp.lt.s32.totalorder %s31_s16, %s31_s16 }
   0xc   :  { %p2965_p3 = scmp.ne.s32.totalorder %s31_s16, %s2964_s26  ;;  %p2970_p5 = scmp.lt.s32.totalorder %s2964_s26, %s2964_s26 }
   0xe   :  { %p2971_p6 = por %p2970_p5, %p2969_p4 }
  0x10   :  { %p2972_p7 = pnand %p2971_p6, %p2965_p3 }
  0x12   :  { %2975 = shalt.err (!%p2972_p7)
}
  0x13   :  { %s3074_s27 = smov 128   ;;  %s3075_s28 = smov 8  }
  0x14   :  { %36 = dma.hbm_to_vmem [thread:$0]  %s3954_s1, 2048, %s31_s16, [#allocation6], %s3074_s27, %s3074_s27, %s3075_s28  }
  0x15   :  { %s2976_s7 = scalar_lea.hbm %s3953_s0, 2048 }
  0x16   :  { %p2977_p8 = scmp.ne.s32.totalorder %s3953_s0, %s2976_s7  ;;  %p2980_p9 = scmp.lt.u32.totalorder %s2976_s7, %s3953_s0 }
  0x18   :  { %p2982_p10 = pnand %p2980_p9, %p2977_p8 }
  0x1a   :  { %2985 = shalt.err (!%p2982_p10)
}
  0x1b   :  { %s2986_s12 = scalar_lea.vmem %s3104_s18, 2048  ;;  %p2991_p12 = scmp.lt.s32.totalorder %s3104_s18, %s3104_s18 }
  0x1c   :  { %p2987_p11 = scmp.ne.s32.totalorder %s3104_s18, %s2986_s12  ;;  %p2992_p13 = scmp.lt.s32.totalorder %s2986_s12, %s2986_s12 }
  0x1e   :  { %p2993_p0 = por %p2992_p13, %p2991_p12 }
  0x20   :  { %p2994_p1 = pnand %p2993_p0, %p2987_p11 }
  0x22   :  { %2997 = shalt.err (!%p2994_p1)
}
  0x23   :  { %24 = dma.hbm_to_vmem [thread:$0]  %s3953_s0, 2048, %s3104_s18, [#allocation3], %s3074_s27, %s3074_s27, %s3075_s28  }
  0x24   :  { %s3076_s14 = smov [#allocation7]   ;;  %s3077_s16 = smov [#allocation8]  }
  0x25   :  { %s42_s15 = sshll.u32 %s3076_s14, 4  ;;  %s54_s17 = sshll.u32 %s3077_s16, 4  ;;  %s43_s15 = int_to_ptr.vmem [resolvable:$true] %s42_s15  ;;  %s3141_s17 = int_to_ptr.vmem [resolvable:$true] %s54_s17 }
  0x26   :  { %s2998_s21 = scalar_lea.hbm %s3955_s2, 256 }
  0x27   :  { %p2999_p2 = scmp.ne.s32.totalorder %s3955_s2, %s2998_s21  ;;  %p3002_p3 = scmp.lt.u32.totalorder %s2998_s21, %s3955_s2 }
  0x29   :  { %p3004_p4 = pnand %p3002_p3, %p2999_p2 }
  0x2b   :  { %3007 = shalt.err (!%p3004_p4)
}
  0x2c   :  { %s3008_s0 = scalar_lea.vmem %s43_s15, 256  ;;  %p3013_p6 = scmp.lt.s32.totalorder %s43_s15, %s43_s15 }
  0x2d   :  { %p3009_p5 = scmp.ne.s32.totalorder %s43_s15, %s3008_s0  ;;  %p3014_p7 = scmp.lt.s32.totalorder %s3008_s0, %s3008_s0 }
  0x2f   :  { %p3015_p8 = por %p3014_p7, %p3013_p6 }
  0x31   :  { %p3016_p9 = pnand %p3015_p8, %p3009_p5 }
  0x33   :  { %3019 = shalt.err (!%p3016_p9)
}
  0x34   :  { %48 = dma.hbm_to_vmem [thread:$0]  %s3955_s2, 256, %s43_s15, [#allocation6], %s3074_s27, %s3074_s27, %s3075_s28  }
  0x35   :  { %s3020_s5 = scalar_lea.hbm %s3956_s3, 256 }
  0x36   :  { %p3021_p10 = scmp.ne.s32.totalorder %s3956_s3, %s3020_s5  ;;  %p3024_p11 = scmp.lt.u32.totalorder %s3020_s5, %s3956_s3 }
  0x38   :  { %p3026_p12 = pnand %p3024_p11, %p3021_p10 }
  0x3a   :  { %3029 = shalt.err (!%p3026_p12)
}
  0x3b   :  { %s3030_s10 = scalar_lea.vmem %s3141_s17, 256  ;;  %p3035_p0 = scmp.lt.s32.totalorder %s3141_s17, %s3141_s17 }
  0x3c   :  { %p3031_p13 = scmp.ne.s32.totalorder %s3141_s17, %s3030_s10  ;;  %p3036_p1 = scmp.lt.s32.totalorder %s3030_s10, %s3030_s10 }
  0x3e   :  { %p3037_p2 = por %p3036_p1, %p3035_p0 }
  0x40   :  { %p3038_p3 = pnand %p3037_p2, %p3031_p13 }
  0x42   :  { %3041 = shalt.err (!%p3038_p3)
}
  0x43   :  { %60 = dma.hbm_to_vmem [thread:$0]  %s3956_s3, 256, %s3141_s17, [#allocation9], %s3074_s27, %s3074_s27, %s3075_s28  }
  0x44   :  { %3064 = dma.done.wait [#allocation3], 2048  }
  0x45   :  { %3065 = vsyncadd [#allocation3], 4294965248 }
  0x46   :  { %3066 = dma.done.wait [#allocation6], 2304  }
  0x47   :  { %3067 = vsyncadd [#allocation6], 4294964992 }
  0x48   :  { %3068 = dma.done.wait [#allocation9], 256  }
  0x49   :  { %3069 = vsyncadd [#allocation9], 4294967040  ;;  %vm81_vm0 = vcmask 130048   ;;  %v3178_v0 = vld [vmem:[#allocation5] sm:$0xff]  ;;  %v3180_v1 = vld [vmem:[#allocation5 + $0x8] sm:$0xff] }
  0x4a   :  { %v73_v2 = vld [vmem:[#allocation7] sm:$0xff]  ;;  %v2643_v3 = vpack.c.bf16 %v3180_v1, %v3178_v0  ;;  %v3185_v4 = vld [vmem:[#allocation5 + $0x10] sm:$0xff]  ;;  %v3187_v5 = vld [vmem:[#allocation5 + $0x18] sm:$0xff] }
  0x4b   :  { %2535 = vmatprep.mubr.msk.f32.mxu0 %vm81_vm0, %v73_v2  ;;  %v2651_v6 = vpack.c.bf16 %v3187_v5, %v3185_v4  ;;  %v3191_v7 = vld [vmem:[#allocation5 + $0x20] sm:$0xff]  ;;  %v3193_v8 = vld [vmem:[#allocation5 + $0x28] sm:$0xff]  ;;  %v3197_v11 = vld [vmem:[#allocation5 + $0x30] sm:$0xff] }
  0x4c   :  { %2644 = vmatprep.subr.bf16.mxu0 %v2643_v3  ;;  %v74_v9 = vld [vmem:[#allocation7 + $0x8] sm:$0xff]  ;;  %v2659_v10 = vpack.c.bf16 %v3193_v8, %v3191_v7  ;;  %v3199_v12 = vld [vmem:[#allocation5 + $0x38] sm:$0xff]  ;;  %v75_v13 = vld [vmem:[#allocation8] sm:$0xff] }
  0x4d   :  { %2646 = vmatpush3.bf16.msra.mxu0 %v2643_v3  ;;  %v76_v14 = vld [vmem:[#allocation8 + $0x8] sm:$0xff]  ;;  %v2667_v16 = vpack.c.bf16 %v3199_v12, %v3197_v11  ;;  %v3208_v17 = vld [vmem:[#allocation5 + $0x40] sm:$0xff]  ;;  %v3210_v18 = vld [vmem:[#allocation5 + $0x48] sm:$0xff] }
  0x4e   :  { %2652 = vmatprep.subr.bf16.mxu0 %v2651_v6  ;;  %v3202_v15 = vpack.c.bf16 %v76_v14, %v75_v13  ;;  %v2675_v19 = vpack.c.bf16 %v3210_v18, %v3208_v17  ;;  %v3218_v20 = vld [vmem:[#allocation5 + $0x50] sm:$0xff]  ;;  %v3220_v21 = vld [vmem:[#allocation5 + $0x58] sm:$0xff]  ;;  %v3226_v23 = vld [vmem:[#allocation5 + $0x60] sm:$0xff] }
  0x4f   :  { %v2683_v22 = vpack.c.bf16 %v3220_v21, %v3218_v20  ;;  %v3228_v24 = vld [vmem:[#allocation5 + $0x68] sm:$0xff]  ;;  %v3234_v26 = vld [vmem:[#allocation5 + $0x70] sm:$0xff]  ;;  %v3236_v27 = vld [vmem:[#allocation5 + $0x78] sm:$0xff] }
  0x50   :  { %2536 = vmatmul.mubr.msk.f32.vlgmr.msra.gmra.mrb[0].mxu0 %vm81_vm0, %v74_v9  ;;  %2648 = vmatprep.subr.bf16.mxu1 %v3202_v15  ;;  %v2691_v25 = vpack.c.bf16 %v3228_v24, %v3226_v23  ;;  %v2699_v28 = vpack.c.bf16 %v3236_v27, %v3234_v26  ;;  %v3276_v45 = vld [vmem:[#allocation2 + $0x8] sm:$0xff]  ;;  %v3278_v46 = vld [vmem:[#allocation2] sm:$0xff]  ;;  %v3282_v52 = vld [vmem:[#allocation2 + $0x10] sm:$0xff] }
  0x51   :  { %2654 = vmatpush3.bf16.msra.mxu0 %v2651_v6  ;;  %2549 = vmatprep.mubr.msk.f32.mxu0 %vm81_vm0, %v73_v2  ;;  %v261_v47 = vand.u32 2147483647, %v3276_v45  ;;  %v260_v48 = vand.u32 2147483647, %v3278_v46  ;;  %v550_v54 = vand.u32 2147483647, %v3282_v52 }
  0x52   :  { %2660 = vmatprep.subr.bf16.mxu0 %v2659_v10  ;;  %2650 = vmatpush3.bf16.msra.mxu1 %v3202_v15  ;;  %v3285_v55 = vld [vmem:[#allocation2 + $0x18] sm:$0xff]  ;;  %v2424_v56 = vmul.f32 -1.442695, %v3276_v45  ;;  %v2423_v59 = vmul.f32 -1.442695, %v3278_v46  ;;  %v3290_v60 = vld [vmem:[#allocation2 + $0x20] sm:$0xff] }
  0x53   :  { %2656 = vmatprep.subr.bf16.mxu1 %v3202_v15  ;;  %v263_v49 = vsub.f32 0.0, %v261_v47  ;;  %v262_v50 = vsub.f32 0.0, %v260_v48  ;;  %v551_v57 = vand.u32 2147483647, %v3285_v55  ;;  %v552_v58 = vsub.f32 0.0, %v550_v54  ;;  %v3292_v63 = vld [vmem:[#allocation2 + $0x28] sm:$0xff] }
  0x54   :  { %2550 = vmatmul.mubr.msk.f32.vlgmr.msra.gmra.mrb[2].mxu0 %vm81_vm0, %v74_v9  ;;  %v2435_v54 = vmul.f32 -1.442695, %v3290_v60 }
  0x55   :  { %2662 = vmatpush3.bf16.msra.mxu0 %v2659_v10  ;;  %2563 = vmatprep.mubr.msk.f32.mxu0 %vm81_vm0, %v73_v2  ;;  %v266_v51 = vmul.f32 1.442695, %v263_v49  ;;  %v264_v53 = vmul.f32 1.442695, %v262_v50  ;;  %v553_v61 = vsub.f32 0.0, %v551_v57  ;;  %v3313_v49 = vld [vmem:[#allocation2 + $0x38] sm:$0xff] }
  0x56   :  { %2668 = vmatprep.subr.bf16.mxu0 %v2667_v16  ;;  %v554_v62 = vmul.f32 1.442695, %v552_v58 }
  0x57   :  { %2778 = vpow2.f32 %v266_v51  ;;  %v556_v6 = vmul.f32 1.442695, %v553_v61  ;;  %v254_v51 = vmax.f32 %v3278_v46, 0.0 }
  0x58   :  { %2564 = vmatmul.mubr.msk.f32.vlgmr.msra.gmra.mrb[4].mxu0 %vm81_vm0, %v74_v9  ;;  %2780 = vpow2.f32 %v264_v53  ;;  %v256_v53 = vmul.f32 %v3178_v0, %v3278_v46 }
  0x59   :  { %2670 = vmatpush3.bf16.msra.mxu0 %v2667_v16  ;;  %2577 = vmatprep.mubr.msk.f32.mxu0 %vm81_vm0, %v73_v2  ;;  %2782 = vpow2.f32 %v2424_v56 }
  0x5a   :  { %2676 = vmatprep.subr.bf16.mxu0 %v2675_v19  ;;  %2784 = vpow2.f32 %v2423_v59 }
  0x5b   :  { %2786 = vpow2.f32 %v554_v62 }
  0x5c   :  { %2578 = vmatmul.mubr.msk.f32.vlgmr.msra.gmra.mrb[6].mxu0 %vm81_vm0, %v74_v9  ;;  %2788 = vpow2.f32 %v556_v6  ;;  %v1131_v6 = vand.u32 2147483647, %v3313_v49 }
  0x5d   :  { %2678 = vmatpush3.bf16.msra.mxu0 %v2675_v19  ;;  %2591 = vmatprep.mubr.msk.f32.mxu0 %vm81_vm0, %v73_v2 }
  0x5e   :  { %2684 = vmatprep.subr.bf16.mxu0 %v2683_v22 }
  0x60   :  { %2592 = vmatmul.mubr.msk.f32.vlgmr.msra.gmra.mrb[8].mxu0 %vm81_vm0, %v74_v9 }
  0x61   :  { %2686 = vmatpush3.bf16.msra.mxu0 %v2683_v22  ;;  %2605 = vmatprep.mubr.msk.f32.mxu0 %vm81_vm0, %v73_v2  ;;  %v3295_v3 = vpop.eup %2778 }
  0x62   :  { %2692 = vmatprep.subr.bf16.mxu0 %v2691_v25  ;;  %v2781_v10 = vpop.eup %2780  ;;  %v277_v13 = vadd.f32 1.0, %v3295_v3  ;;  %v283_v58 = vand.u32 2147483647, %v3295_v3 }
  0x63   :  { %v2783_v16 = vpop.eup %2782  ;;  %v268_v19 = vadd.f32 1.0, %v2781_v10 }
  0x64   :  { %2606 = vmatmul.mubr.msk.f32.vlgmr.msra.gmra.mrb[10].mxu0 %vm81_vm0, %v74_v9  ;;  %2790 = vlog2.f32 %v277_v13  ;;  %vm3335_vm2 = vcmp.lt.f32.partialorder %v283_v58, 0.0004427343 }
  0x65   :  { %2694 = vmatpush3.bf16.msra.mxu0 %v2691_v25  ;;  %2619 = vmatprep.mubr.msk.f32.mxu0 %vm81_vm0, %v73_v2  ;;  %v2430_v25 = vmul.f32 -1.442695, %v3285_v55 }
  0x66   :  { %2700 = vmatprep.subr.bf16.mxu0 %v2699_v28 }
  0x68   :  { %2620 = vmatmul.mubr.msk.f32.vlgmr.msra.gmra.mrb[12].mxu0 %vm81_vm0, %v74_v9 }
  0x69   :  { %2702 = vmatpush3.bf16.msra.mxu0 %v2699_v28  ;;  %2633 = vmatprep.mubr.msk.f32.mxu0 %vm81_vm0, %v73_v2  ;;  %v840_v2 = vand.u32 2147483647, %v3290_v60 }
  0x6b   :  { %v842_v14 = vsub.f32 0.0, %v840_v2 }
  0x6c   :  { %2634 = vmatmul.mubr.msk.f32.vlgmr.msra.gmra.mrb[14].mxu0 %vm81_vm0, %v74_v9  ;;  %v841_v9 = vand.u32 2147483647, %v3292_v63 }
  0x6d   :  { %v844_v28 = vmul.f32 1.442695, %v842_v14 }
  0x6e   :  { %v843_v22 = vsub.f32 0.0, %v841_v9 }
 0x123   :  { %v2537_v29 = vpop.f32.mrb[0].mxu0 }
 0x124   :  { %v154_v30 = vpop.f32.mrb[1].mxu0 }
 0x125   :  { %2542 = vmatprep.mubr.msk.f32.mxu1 %vm81_vm0, %v154_v30  ;;  %v2785_v30 = vpop.eup %2784 }
 0x126   :  { %2543 = vmatmul.mubr.msk.f32.vlgmr.msra.gmra.mrb[0].mxu1 %vm81_vm0, %v2537_v29  ;;  %v295_v29 = vadd.f32 1.0, %v2783_v16  ;;  %v258_v16 = vsub.f32 %v254_v51, %v256_v53  ;;  %v546_v51 = vmul.f32 %v3185_v4, %v3282_v52 }
 0x127   :  { %v2551_v31 = vpop.f32.mrb[2].mxu0  ;;  %2658 = vmatpush3.bf16.msra.mxu1 %v3202_v15 }
 0x128   :  { %v444_v32 = vpop.f32.mrb[3].mxu0  ;;  %2664 = vmatprep.subr.bf16.mxu1 %v3202_v15 }
 0x129   :  { %2556 = vmatprep.mubr.msk.f32.mxu1 %vm81_vm0, %v444_v32  ;;  %v3301_v32 = vpop.eup %2786 }
 0x12a   :  { %2557 = vmatmul.mubr.msk.f32.vlgmr.msra.gmra.mrb[2].mxu1 %vm81_vm0, %v2551_v31  ;;  %v846_v31 = vmul.f32 1.442695, %v843_v22  ;;  %v561_v14 = vmul.f32 -0.5, %v3301_v32 }
 0x12b   :  { %v2565_v33 = vpop.f32.mrb[4].mxu0  ;;  %2666 = vmatpush3.bf16.msra.mxu1 %v3202_v15 }
 0x12c   :  { %v734_v34 = vpop.f32.mrb[5].mxu0  ;;  %2672 = vmatprep.subr.bf16.mxu1 %v3202_v15 }
 0x12d   :  { %2570 = vmatprep.mubr.msk.f32.mxu1 %vm81_vm0, %v734_v34  ;;  %v558_v34 = vadd.f32 1.0, %v3301_v32 }
 0x12e   :  { %2571 = vmatmul.mubr.msk.f32.vlgmr.msra.gmra.mrb[4].mxu1 %vm81_vm0, %v2565_v33  ;;  %v294_v33 = vadd.f32 1.0, %v2785_v30 }
 0x12f   :  { %v2579_v35 = vpop.f32.mrb[6].mxu0  ;;  %2674 = vmatpush3.bf16.msra.mxu1 %v3202_v15 }
 0x130   :  { %v1024_v36 = vpop.f32.mrb[7].mxu0  ;;  %2680 = vmatprep.subr.bf16.mxu1 %v3202_v15 }
 0x131   :  { %2584 = vmatprep.mubr.msk.f32.mxu1 %vm81_vm0, %v1024_v36  ;;  %v271_v36 = vmul.f32 -0.5, %v2781_v10 }
 0x132   :  { %2585 = vmatmul.mubr.msk.f32.vlgmr.msra.gmra.mrb[6].mxu1 %vm81_vm0, %v2579_v35  ;;  %v3304_v35 = vpop.eup %2788 }
 0x133   :  { %v2593_v37 = vpop.f32.mrb[8].mxu0  ;;  %2682 = vmatpush3.bf16.msra.mxu1 %v3202_v15  ;;  %v272_v47 = vadd.f32 1.0, %v271_v36  ;;  %v562_v36 = vadd.f32 1.0, %v561_v14 }
 0x134   :  { %v1314_v38 = vpop.f32.mrb[9].mxu0  ;;  %2688 = vmatprep.subr.bf16.mxu1 %v3202_v15 }
 0x135   :  { %2598 = vmatprep.mubr.msk.f32.mxu1 %vm81_vm0, %v1314_v38  ;;  %v2791_v38 = vpop.eup %2790  ;;  %v273_v13 = vmul.f32 %v2781_v10, %v272_v47 }
 0x136   :  { %2599 = vmatmul.mubr.msk.f32.vlgmr.msra.gmra.mrb[8].mxu1 %vm81_vm0, %v2593_v37  ;;  %v280_v37 = vmul.f32 -0.5, %v3295_v3  ;;  %v279_v2 = vmul.f32 0.6931472, %v2791_v38 }
 0x137   :  { %v2607_v39 = vpop.f32.mrb[10].mxu0  ;;  %2690 = vmatpush3.bf16.msra.mxu1 %v3202_v15 }
 0x138   :  { %v1604_v40 = vpop.f32.mrb[11].mxu0  ;;  %2696 = vmatprep.subr.bf16.mxu1 %v3202_v15  ;;  %v281_v48 = vadd.f32 1.0, %v280_v37  ;;  %v570_v37 = vmul.f32 -0.5, %v3304_v35 }
 0x139   :  { %2612 = vmatprep.mubr.msk.f32.mxu1 %vm81_vm0, %v1604_v40 }
 0x13a   :  { %2613 = vmatmul.mubr.msk.f32.vlgmr.msra.gmra.mrb[10].mxu1 %vm81_vm0, %v2607_v39  ;;  %v3307_v39 = vld [vmem:[#allocation2 + $0x30] sm:$0xff] }
 0x13b   :  { %v2621_v41 = vpop.f32.mrb[12].mxu0  ;;  %2698 = vmatpush3.bf16.msra.mxu1 %v3202_v15  ;;  %v1130_v56 = vand.u32 2147483647, %v3307_v39  ;;  %v2441_v38 = vmul.f32 -1.442695, %v3307_v39 }
 0x13c   :  { %v1894_v42 = vpop.f32.mrb[13].mxu0  ;;  %2704 = vmatprep.subr.bf16.mxu1 %v3202_v15 }
 0x13d   :  { %2626 = vmatprep.mubr.msk.f32.mxu1 %vm81_vm0, %v1894_v42  ;;  %v257_v42 = vmul.f32 %v3180_v1, %v3276_v45 }
 0x13e   :  { %2627 = vmatmul.mubr.msk.f32.vlgmr.msra.gmra.mrb[12].mxu1 %vm81_vm0, %v2621_v41  ;;  %v255_v41 = vmax.f32 %v3276_v45, 0.0  ;;  %v274_v45 = vand.u32 2147483647, %v2781_v10  ;;  %v2436_v10 = vmul.f32 -1.442695, %v3292_v63 }
 0x13f   :  { %v2635_v43 = vpop.f32.mrb[14].mxu0  ;;  %2706 = vmatpush3.bf16.msra.mxu1 %v3202_v15  ;;  %v2429_v15 = vmul.f32 -1.442695, %v3282_v52 }
 0x140   :  { %v2184_v44 = vpop.f32.mrb[15].mxu0  ;;  %v259_v62 = vsub.f32 %v255_v41, %v257_v42  ;;  %vm3331_vm1 = vcmp.lt.f32.partialorder %v274_v45, 0.0004427343  ;;  %v564_v42 = vand.u32 2147483647, %v3301_v32  ;;  %v571_v45 = vadd.f32 1.0, %v570_v37 }
 0x141   :  { %2640 = vmatprep.mubr.msk.f32.mxu1 %vm81_vm0, %v2184_v44  ;;  %2792 = vpow2.f32 %v2429_v15 }
 0x142   :  { %2641 = vmatmul.mubr.msk.f32.vlgmr.msra.gmra.mrb[14].mxu1 %vm81_vm0, %v2635_v43  ;;  %2794 = vlog2.f32 %v268_v19  ;;  %v567_v43 = vadd.f32 1.0, %v3304_v35  ;;  %v282_v19 = vmul.f32 %v3295_v3, %v281_v48  ;;  %vm3362_vm3 = vcmp.lt.f32.partialorder %v564_v42, 0.0004427343 }
 0x143   :  { %2796 = vpow2.f32 %v2430_v25  ;;  %v1132_v25 = vsub.f32 0.0, %v1130_v56  ;;  %v563_v56 = vmul.f32 %v3301_v32, %v562_v36 }
 0x144   :  { %2798 = vpow2.f32 %v844_v28  ;;  %v285_v47 = vsel %vm3335_vm2, %v282_v19, %v279_v2  ;;  %v573_v2 = vand.u32 2147483647, %v3304_v35 }
 0x145   :  { %2800 = vrcp.f32 %v295_v29 }
 0x146   :  { %2802 = vpow2.f32 %v846_v31  ;;  %vm3389_vm4 = vcmp.lt.f32.partialorder %v573_v2, 0.0004427343  ;;  %v837_v2 = vmul.f32 %v3193_v8, %v3292_v63 }
 0x147   :  { %2804 = vrcp.f32 %v294_v33  ;;  %v1133_v33 = vsub.f32 0.0, %v1131_v6  ;;  %v2442_v6 = vmul.f32 -1.442695, %v3313_v49 }
 0x148   :  { %2806 = vlog2.f32 %v558_v34  ;;  %v3345_v34 = vld [vmem:[#allocation2 + $0x40] sm:$0xff] }
 0x149   :  { %2808 = vlog2.f32 %v567_v43  ;;  %v1134_v43 = vmul.f32 1.442695, %v1132_v25  ;;  %v1420_v48 = vand.u32 2147483647, %v3345_v34  ;;  %v1136_v53 = vmul.f32 1.442695, %v1133_v33 }
 0x14b   :  { %v2793_v40 = vpop.eup %2792  ;;  %v1422_v32 = vsub.f32 0.0, %v1420_v48 }
 0x14c   :  { %v2795_v44 = vpop.eup %2794  ;;  %v584_v59 = vadd.f32 1.0, %v2793_v40 }
 0x14d   :  { %v2797_v50 = vpop.eup %2796  ;;  %v270_v46 = vmul.f32 0.6931472, %v2795_v44 }
 0x14e   :  { %v3320_v57 = vpop.eup %2798  ;;  %v585_v15 = vadd.f32 1.0, %v2797_v50  ;;  %2810 = vrcp.f32 %v584_v59  ;;  %v544_v50 = vmax.f32 %v3282_v52, 0.0  ;;  %v547_v52 = vmul.f32 %v3187_v5, %v3285_v55 }
 0x14f   :  { %v3323_v61 = vpop.eup %2800  ;;  %v848_v22 = vadd.f32 1.0, %v3320_v57  ;;  %2812 = vpow2.f32 %v2435_v54  ;;  %v276_v41 = vsel %vm3331_vm1, %v273_v13, %v270_v46  ;;  %v545_v46 = vmax.f32 %v3285_v55, 0.0 }
 0x150   :  { %v3326_v9 = vpop.eup %2802  ;;  %v3342_v31 = vmul.f32 %v3323_v61, %v3180_v1  ;;  %2814 = vrcp.f32 %v585_v15  ;;  %v851_v13 = vmul.f32 -0.5, %v3320_v57  ;;  %v3372_v14 = vadd.f32 %v276_v41, %v258_v16 }
 0x151   :  { %v2805_v30 = vpop.eup %2804  ;;  %v857_v3 = vadd.f32 1.0, %v3326_v9  ;;  %2816 = vlog2.f32 %v848_v22  ;;  %v3374_v15 = vadd.f32 %v285_v47, %v259_v62  ;;  %v548_v19 = vsub.f32 %v544_v50, %v546_v51  ;;  %v3376_v22 = vld [vmem:[#allocation2 + $0x48] sm:$0xff] }
 0x152   :  { %v2807_v40 = vpop.eup %2806  ;;  %v3353_v44 = vmul.f32 %v2805_v30, %v3178_v0  ;;  %2818 = vpow2.f32 %v2436_v10  ;;  %v572_v10 = vmul.f32 %v3304_v35, %v571_v45  ;;  %v860_v55 = vmul.f32 -0.5, %v3326_v9 }
 0x153   :  { %2820 = vlog2.f32 %v857_v3  ;;  %v560_v54 = vmul.f32 0.6931472, %v2807_v40  ;;  %v2809_v58 = vpop.eup %2808  ;;  %v3383_v33 = vadd.f32 %v2805_v30, %v3178_v0  ;;  %v3387_v62 = vadd.f32 %v3323_v61, %v3180_v1 }
 0x154   :  { %2822 = vpow2.f32 %v2441_v38  ;;  %v569_v29 = vmul.f32 0.6931472, %v2809_v58  ;;  %v549_v37 = vsub.f32 %v545_v46, %v547_v52  ;;  %v852_v38 = vadd.f32 1.0, %v851_v13  ;;  %v3411_v58 = vld [vmem:[#allocation2 + $0x50] sm:$0xff] }
 0x155   :  { %2824 = vpow2.f32 %v1134_v43  ;;  %v566_v28 = vsel %vm3362_vm3, %v563_v56, %v560_v54  ;;  %v1421_v35 = vand.u32 2147483647, %v3376_v22  ;;  %v1424_v40 = vmul.f32 1.442695, %v1422_v32  ;;  %v3422_v32 = vld [vmem:[#allocation2 + $0x58] sm:$0xff] }
 0x156   :  { %2826 = vpow2.f32 %v1136_v53  ;;  %v3394_v42 = vadd.f32 %v566_v28, %v548_v19  ;;  %v854_v1 = vand.u32 2147483647, %v3320_v57  ;;  %v2447_v61 = vmul.f32 -1.442695, %v3345_v34 }
 0x157   :  { %2828 = vpow2.f32 %v2442_v6  ;;  %v575_v43 = vsel %vm3389_vm4, %v572_v10, %v569_v29  ;;  %v861_v48 = vadd.f32 1.0, %v860_v55  ;;  %v834_v53 = vmax.f32 %v3290_v60, 0.0 }
 0x158   :  { %v2811_v25 = vpop.eup %2810  ;;  %v835_v54 = vmax.f32 %v3292_v63, 0.0  ;;  %v836_v56 = vmul.f32 %v3191_v7, %v3290_v60  ;;  %v863_v45 = vand.u32 2147483647, %v3326_v9  ;;  %v853_v6 = vmul.f32 %v3320_v57, %v852_v38 }
 0x159   :  { %v2813_v3 = vpop.eup %2812  ;;  %v3397_v0 = vmul.f32 %v2811_v25, %v3185_v4  ;;  %v3404_v47 = vadd.f32 %v2811_v25, %v3185_v4  ;;  %2830 = vpow2.f32 %v1424_v40  ;;  %vm3418_vm5 = vcmp.lt.f32.partialorder %v854_v1, 0.0004427343 }
 0x15a   :  { %v2815_v36 = vpop.eup %2814  ;;  %v874_v50 = vadd.f32 1.0, %v2813_v3  ;;  %v1423_v60 = vsub.f32 0.0, %v1421_v35  ;;  %2832 = vpow2.f32 %v2447_v61  ;;  %v862_v63 = vmul.f32 %v3326_v9, %v861_v48  ;;  %v3442_v35 = vld [vmem:[#allocation2 + $0x60] sm:$0xff] }
 0x15b   :  { %v2817_v41 = vpop.eup %2816  ;;  %v3425_v19 = vmul.f32 %v2815_v36, %v3187_v5  ;;  %v1710_v57 = vand.u32 2147483647, %v3411_v58  ;;  %v838_v29 = vsub.f32 %v834_v53, %v836_v56  ;;  %vm3431_vm6 = vcmp.lt.f32.partialorder %v863_v45, 0.0004427343 }
 0x15c   :  { %v2819_v30 = vpop.eup %2818  ;;  %v850_v4 = vmul.f32 0.6931472, %v2817_v41  ;;  %2834 = vrcp.f32 %v874_v50  ;;  %v3436_v3 = vadd.f32 %v2815_v36, %v3187_v5  ;;  %v1711_v9 = vand.u32 2147483647, %v3422_v32 }
 0x15d   :  { %v2821_v51 = vpop.eup %2820  ;;  %v875_v13 = vadd.f32 1.0, %v2819_v30  ;;  %v3444_v41 = vadd.f32 %v575_v43, %v549_v37  ;;  %v839_v1 = vsub.f32 %v835_v54, %v837_v2  ;;  %v1426_v61 = vmul.f32 1.442695, %v1423_v60  ;;  %v3446_v30 = vld [vmem:[#allocation2 + $0x68] sm:$0xff] }
 0x15e   :  { %v2823_v59 = vpop.eup %2822  ;;  %v859_v25 = vmul.f32 0.6931472, %v2821_v51  ;;  %v856_v16 = vsel %vm3418_vm5, %v853_v6, %v850_v4  ;;  %v2448_v48 = vmul.f32 -1.442695, %v3376_v22  ;;  %v1712_v50 = vsub.f32 0.0, %v1710_v57  ;;  %v3452_v51 = vld [vmem:[#allocation2 + $0x70] sm:$0xff] }
 0x15f   :  { %v3416_v46 = vpop.eup %2824  ;;  %v1164_v55 = vadd.f32 1.0, %v2823_v59  ;;  %2836 = vrcp.f32 %v875_v13  ;;  %v3454_v53 = vadd.f32 %v856_v16, %v838_v29  ;;  %v2000_v43 = vand.u32 2147483647, %v3442_v35 }
 0x160   :  { %v3429_v28 = vpop.eup %2826  ;;  %v1138_v38 = vadd.f32 1.0, %v3416_v46  ;;  %v865_v5 = vsel %vm3431_vm6, %v862_v63, %v859_v25  ;;  %v1141_v37 = vmul.f32 -0.5, %v3416_v46  ;;  %v1713_v56 = vsub.f32 0.0, %v1711_v9  ;;  %v3467_v25 = vld [vmem:[#allocation2 + $0x78] sm:$0xff] }
 0x161   :  { %v2829_v40 = vpop.eup %2828  ;;  %v1147_v36 = vadd.f32 1.0, %v3429_v28  ;;  %3970 = vst [vmem:[#allocation15_spill] sm:$0xff] %v3454_v53  ;;  %2838 = vrcp.f32 %v1164_v55  ;;  %v2001_v45 = vand.u32 2147483647, %v3446_v30  ;;  %v1124_v59 = vmax.f32 %v3307_v39, 0.0 }
 0x162   :  { %2840 = vlog2.f32 %v1138_v38  ;;  %v1165_v54 = vadd.f32 1.0, %v2829_v40  ;;  %v1125_v2 = vmax.f32 %v3313_v49, 0.0  ;;  %v2290_v4 = vand.u32 2147483647, %v3452_v51 }
 0x163   :  { %2842 = vpow2.f32 %v1426_v61  ;;  %v3462_v6 = vpop.eup %2830  ;;  %v1126_v52 = vmul.f32 %v3197_v11, %v3307_v39  ;;  %v1150_v13 = vmul.f32 -0.5, %v3429_v28  ;;  %v1714_v60 = vmul.f32 1.442695, %v1712_v50 }
 0x164   :  { %2844 = vlog2.f32 %v1147_v36  ;;  %v2833_v63 = vpop.eup %2832  ;;  %v1127_v57 = vmul.f32 %v3199_v12, %v3313_v49  ;;  %v1142_v29 = vadd.f32 1.0, %v1141_v37  ;;  %v2002_v10 = vsub.f32 0.0, %v2000_v43 }
 0x165   :  { %2846 = vpow2.f32 %v2448_v48  ;;  %v3471_v55 = vadd.f32 %v865_v5, %v839_v1  ;;  %v1144_v16 = vand.u32 2147483647, %v3416_v46  ;;  %v1716_v38 = vmul.f32 1.442695, %v1713_v56 }
 0x166   :  { %v2003_v9 = vsub.f32 0.0, %v2001_v45  ;;  %v2835_v39 = vpop.eup %2834  ;;  %v1153_v40 = vand.u32 2147483647, %v3429_v28  ;;  %v1428_v61 = vadd.f32 1.0, %v3462_v6  ;;  %v2291_v36 = vand.u32 2147483647, %v3467_v25 }
 0x167   :  { %v2292_v50 = vsub.f32 0.0, %v2290_v4  ;;  %v3477_v53 = vsub.f32 %v1124_v59, %v1126_v52  ;;  %v1151_v49 = vadd.f32 1.0, %v1150_v13  ;;  %v1454_v37 = vadd.f32 1.0, %v2833_v63 }
 0x168   :  { %2848 = vpow2.f32 %v1714_v60  ;;  %v3479_v1 = vsub.f32 %v1125_v2, %v1127_v57  ;;  %v3482_v5 = vmul.f32 %v3416_v46, %v1142_v29  ;;  %v2004_v43 = vmul.f32 1.442695, %v2002_v10 }
 0x169   :  { %v2837_v48 = vpop.eup %2836  ;;  %2850 = vrcp.f32 %v1165_v54  ;;  %v3485_v56 = vmul.f32 %v2835_v39, %v3191_v7  ;;  %vm3487_vm7 = vcmp.lt.f32.partialorder %v1144_v16, 0.0004427343  ;;  %v2006_v59 = vmul.f32 1.442695, %v2003_v9 }
 0x16a   :  { %2852 = vpow2.f32 %v1716_v38  ;;  %v3492_v52 = vadd.f32 %v2835_v39, %v3191_v7  ;;  %vm3494_vm8 = vcmp.lt.f32.partialorder %v1153_v40, 0.0004427343  ;;  %v2293_v46 = vsub.f32 0.0, %v2291_v36 }
 0x16b   :  { %v2839_v4 = vpop.eup %2838  ;;  %2854 = vlog2.f32 %v1428_v61  ;;  %v2294_v54 = vmul.f32 1.442695, %v2292_v50  ;;  %v3499_v60 = vmul.f32 %v2837_v48, %v3193_v8  ;;  %v3502_v63 = vmul.f32 %v3429_v28, %v1151_v49 }
 0x16c   :  { %3973 = vst [vmem:[#allocation16_spill] sm:$0xff] %v3492_v52  ;;  %v2841_v13 = vpop.eup %2840  ;;  %2856 = vrcp.f32 %v1454_v37  ;;  %v2453_v57 = vmul.f32 -1.442695, %v3411_v58  ;;  %v3508_v7 = vadd.f32 %v2837_v48, %v3193_v8  ;;  %v1431_v10 = vmul.f32 -0.5, %v3462_v6 }
 0x16d   :  { %v3505_v29 = vpop.eup %2842  ;;  %v2454_v16 = vmul.f32 -1.442695, %v3422_v32  ;;  %2858 = vpow2.f32 %v2004_v43  ;;  %v1414_v9 = vmax.f32 %v3345_v34, 0.0  ;;  %v1415_v39 = vmax.f32 %v3376_v22, 0.0 }
 0x16e   :  { %3976 = vst [vmem:[#allocation17_spill] sm:$0xff] %v3508_v7  ;;  %v2845_v38 = vpop.eup %2844  ;;  %2860 = vpow2.f32 %v2006_v59  ;;  %v2459_v28 = vmul.f32 -1.442695, %v3442_v35  ;;  %v1140_v61 = vmul.f32 0.6931472, %v2841_v13  ;;  %v1416_v36 = vmul.f32 %v3208_v17, %v3345_v34 }
 0x16f   :  { %v2847_v40 = vpop.eup %2846  ;;  %2862 = vpow2.f32 %v2294_v54  ;;  %v2296_v8 = vmul.f32 1.442695, %v2293_v46  ;;  %v1417_v50 = vmul.f32 %v3210_v18, %v3376_v22  ;;  %v1434_v49 = vand.u32 2147483647, %v3462_v6 }
 0x170   :  { %v1437_v37 = vadd.f32 1.0, %v3505_v29  ;;  %2864 = vpow2.f32 %v2453_v57  ;;  %v3522_v48 = vmul.f32 %v2839_v4, %v3197_v11  ;;  %v1432_v43 = vadd.f32 1.0, %v1431_v10 }
 0x171   :  { %2866 = vpow2.f32 %v2454_v16  ;;  %v2460_v59 = vmul.f32 -1.442695, %v3446_v30  ;;  %v1149_v34 = vmul.f32 0.6931472, %v2845_v38  ;;  %v3528_v46 = vadd.f32 %v2839_v4, %v3197_v11 }
 0x172   :  { %3977 = vst [vmem:[#allocation18_spill] sm:$0xff] %v3522_v48  ;;  %v3525_v13 = vpop.eup %2848  ;;  %v1455_v54 = vadd.f32 1.0, %v2847_v40  ;;  %2868 = vpow2.f32 %v2459_v28  ;;  %v1146_v57 = vsel %vm3487_vm7, %v3482_v5, %v1140_v61  ;;  %v1440_v7 = vmul.f32 -0.5, %v3505_v29 }
 0x173   :  { %3978 = vst [vmem:[#allocation19_spill] sm:$0xff] %v3528_v46  ;;  %v2851_v22 = vpop.eup %2850  ;;  %2870 = vpow2.f32 %v2296_v8  ;;  %v2465_v10 = vmul.f32 -1.442695, %v3452_v51  ;;  %v1418_v48 = vsub.f32 %v1414_v9, %v1416_v36  ;;  %v3537_v52 = vsub.f32 %v1415_v39, %v1417_v50 }
 0x174   :  { %v3535_v16 = vpop.eup %2852  ;;  %2872 = vlog2.f32 %v1437_v37  ;;  %v2466_v11 = vmul.f32 -1.442695, %v3467_v25  ;;  %v1433_v38 = vmul.f32 %v3462_v6, %v1432_v43  ;;  %vm3541_vm9 = vcmp.lt.f32.partialorder %v1434_v49, 0.0004427343 }
 0x175   :  { %v2855_v4 = vpop.eup %2854  ;;  %v1718_v5 = vadd.f32 1.0, %v3525_v13  ;;  %2874 = vpow2.f32 %v2460_v59  ;;  %v1155_v9 = vsel %vm3494_vm8, %v3502_v63, %v1149_v34  ;;  %v3550_v39 = vadd.f32 %v1146_v57, %v3477_v53 }
 0x176   :  { %v2857_v45 = vpop.eup %2856  ;;  %v1443_v40 = vand.u32 2147483647, %v3505_v29  ;;  %2876 = vrcp.f32 %v1455_v54  ;;  %v3556_v6 = vmul.f32 %v2851_v22, %v3199_v12  ;;  %v1441_v36 = vadd.f32 1.0, %v1440_v7 }
 0x177   :  { %3981 = vst [vmem:[#allocation20_spill] sm:$0xff] %v3550_v39  ;;  %v3553_v61 = vpop.eup %2858  ;;  %v1727_v8 = vadd.f32 1.0, %v3535_v16  ;;  %2878 = vpow2.f32 %v2465_v10  ;;  %v3562_v2 = vadd.f32 %v2851_v22, %v3199_v12  ;;  %v1430_v63 = vmul.f32 0.6931472, %v2855_v4 }
 0x178   :  { %3982 = vst [vmem:[#allocation21_spill] sm:$0xff] %v3556_v6  ;;  %v3559_v50 = vpop.eup %2860  ;;  %v1721_v53 = vmul.f32 -0.5, %v3525_v13  ;;  %2880 = vpow2.f32 %v2466_v11  ;;  %v3568_v37 = vadd.f32 %v1155_v9, %v3479_v1  ;;  %v1704_v43 = vmax.f32 %v3411_v58, 0.0 }
 0x179   :  { %3983 = vst [vmem:[#allocation22_spill] sm:$0xff] %v3562_v2  ;;  %v3565_v49 = vpop.eup %2862  ;;  %v1705_v7 = vmax.f32 %v3422_v32, 0.0  ;;  %2882 = vlog2.f32 %v1718_v5  ;;  %vm3572_vm10 = vcmp.lt.f32.partialorder %v1443_v40, 0.0004427343  ;;  %v1706_v12 = vmul.f32 %v3218_v20, %v3411_v58 }
 0x17a   :  { %3984 = vst [vmem:[#allocation23_spill] sm:$0xff] %v3568_v37  ;;  %v2865_v59 = vpop.eup %2864  ;;  %v1730_v54 = vmul.f32 -0.5, %v3535_v16  ;;  %v2008_v22 = vadd.f32 1.0, %v3553_v61  ;;  %v3581_v1 = vmul.f32 %v3505_v29, %v1441_v36  ;;  %v1707_v10 = vmul.f32 %v3220_v21, %v3422_v32 }
 0x17b   :  { %v2867_v57 = vpop.eup %2866  ;;  %2884 = vlog2.f32 %v1727_v8  ;;  %v2017_v11 = vadd.f32 1.0, %v3559_v50  ;;  %v1436_v5 = vsel %vm3541_vm9, %v1433_v38, %v1430_v63  ;;  %v1722_v9 = vadd.f32 1.0, %v1721_v53 }
 0x17c   :  { %v2869_v4 = vpop.eup %2868  ;;  %v1724_v58 = vand.u32 2147483647, %v3525_v13  ;;  %v2298_v40 = vadd.f32 1.0, %v3565_v49  ;;  %v3593_v29 = vmul.f32 %v2857_v45, %v3208_v17  ;;  %v3596_v36 = vadd.f32 %v2857_v45, %v3208_v17 }
 0x17d   :  { %v3590_v2 = vpop.eup %2870  ;;  %v1733_v32 = vand.u32 2147483647, %v3535_v16  ;;  %v1744_v8 = vadd.f32 1.0, %v2865_v59  ;;  %v3599_v6 = vsub.f32 %v1704_v43, %v1706_v12  ;;  %v1731_v38 = vadd.f32 1.0, %v1730_v54 }
 0x17e   :  { %3987 = vst [vmem:[#allocation24_spill] sm:$0xff] %v3593_v29  ;;  %v2873_v46 = vpop.eup %2872  ;;  %v1745_v28 = vadd.f32 1.0, %v2867_v57  ;;  %2886 = vlog2.f32 %v2008_v22  ;;  %v3601_v53 = vadd.f32 %v1436_v5, %v1418_v48  ;;  %v3603_v37 = vsub.f32 %v1705_v7, %v1707_v10 }
 0x17f   :  { %v2875_v63 = vpop.eup %2874  ;;  %2888 = vlog2.f32 %v2017_v11  ;;  %v2034_v39 = vadd.f32 1.0, %v2869_v4  ;;  %v3606_v17 = vmul.f32 %v3525_v13, %v1722_v9  ;;  %vm3608_vm11 = vcmp.lt.f32.partialorder %v1724_v58, 0.0004427343 }
 0x180   :  { %v2877_v29 = vpop.eup %2876  ;;  %2890 = vlog2.f32 %v2298_v40  ;;  %v2307_v43 = vadd.f32 1.0, %v3590_v2  ;;  %v1439_v12 = vmul.f32 0.6931472, %v2873_v46  ;;  %vm3613_vm12 = vcmp.lt.f32.partialorder %v1733_v32, 0.0004427343 }
 0x181   :  { %v2879_v59 = vpop.eup %2878  ;;  %2892 = vrcp.f32 %v1744_v8  ;;  %v1994_v7 = vmax.f32 %v3442_v35, 0.0  ;;  %v1996_v13 = vmul.f32 %v3226_v23, %v3442_v35  ;;  %v3621_v22 = vmul.f32 %v3535_v16, %v1731_v38 }
 0x182   :  { %v2881_v54 = vpop.eup %2880  ;;  %2894 = vrcp.f32 %v1745_v28  ;;  %v1995_v57 = vmax.f32 %v3446_v30, 0.0  ;;  %v2035_v10 = vadd.f32 1.0, %v2875_v63  ;;  %v3625_v46 = vmul.f32 %v2877_v29, %v3210_v18 }
 0x183   :  { %v2883_v11 = vpop.eup %2882  ;;  %v1997_v4 = vmul.f32 %v3228_v24, %v3446_v30  ;;  %v2011_v5 = vmul.f32 -0.5, %v3553_v61  ;;  %2896 = vrcp.f32 %v2034_v39  ;;  %v3631_v35 = vadd.f32 %v2877_v29, %v3210_v18 }
 0x184   :  { %v2020_v16 = vmul.f32 -0.5, %v3559_v50  ;;  %2898 = vlog2.f32 %v2307_v43  ;;  %v2324_v9 = vadd.f32 1.0, %v2879_v59  ;;  %v1445_v40 = vsel %vm3572_vm10, %v3581_v1, %v1439_v12 }
 0x185   :  { %v2885_v58 = vpop.eup %2884  ;;  %v3637_v32 = vsub.f32 %v1994_v7, %v1996_v13  ;;  %v2301_v8 = vmul.f32 -0.5, %v3565_v49  ;;  %v2325_v24 = vadd.f32 1.0, %v2881_v54  ;;  %v1720_v30 = vmul.f32 0.6931472, %v2883_v11 }
 0x186   :  { %v2014_v39 = vand.u32 2147483647, %v3553_v61  ;;  %2900 = vrcp.f32 %v2035_v10  ;;  %v2284_v18 = vmax.f32 %v3452_v51, 0.0  ;;  %v2012_v29 = vadd.f32 1.0, %v2011_v5 }
 0x187   :  { %v2023_v38 = vand.u32 2147483647, %v3559_v50  ;;  %v2285_v28 = vmax.f32 %v3467_v25, 0.0  ;;  %v2286_v34 = vmul.f32 %v3234_v26, %v3452_v51  ;;  %v1729_v63 = vmul.f32 0.6931472, %v2885_v58  ;;  %v2939_v51 = vld [vmem:[#allocation5] sm:$0xff] }
 0x188   :  { %v2887_v1 = vpop.eup %2886  ;;  %v2021_v43 = vadd.f32 1.0, %v2020_v16  ;;  %v2287_v59 = vmul.f32 %v3236_v27, %v3467_v25  ;;  %2902 = vrcp.f32 %v2324_v9  ;;  %v1999_v7 = vsub.f32 %v1995_v57, %v1997_v4 }
 0x189   :  { %v2889_v12 = vpop.eup %2888  ;;  %v2302_v13 = vadd.f32 1.0, %v2301_v8  ;;  %v2310_v54 = vmul.f32 -0.5, %v3590_v2  ;;  %2904 = vrcp.f32 %v2325_v24  ;;  %v3650_v11 = vadd.f32 %v1445_v40, %v3537_v52 }
 0x18a   :  { %v2891_v10 = vpop.eup %2890  ;;  %v1726_v26 = vsel %vm3608_vm11, %v3606_v17, %v1720_v30  ;;  %vm3655_vm13 = vcmp.lt.f32.partialorder %v2014_v39, 0.0004427343  ;;  %v2304_v27 = vand.u32 2147483647, %v3565_v49  ;;  %v2010_v57 = vmul.f32 0.6931472, %v2887_v1 }
 0x18b   :  { %v2893_v25 = vpop.eup %2892  ;;  %v2013_v4 = vmul.f32 %v3553_v61, %v2012_v29  ;;  %vm3661_vm14 = vcmp.lt.f32.partialorder %v2023_v38, 0.0004427343  ;;  %v2288_v52 = vsub.f32 %v2284_v18, %v2286_v34  ;;  %v1735_v17 = vsel %vm3613_vm12, %v3621_v22, %v1729_v63 }
 0x18c   :  { %v2895_v16 = vpop.eup %2894  ;;  %v2019_v45 = vmul.f32 0.6931472, %v2889_v12  ;;  %v2022_v9 = vmul.f32 %v3559_v50, %v2021_v43  ;;  %v3669_v58 = vsub.f32 %v2285_v28, %v2287_v59  ;;  %v3672_v8 = vadd.f32 %v1726_v26, %v3599_v6  ;;  %v2938_v12 = vld [vmem:[#allocation5 + $0x8] sm:$0xff] }
 0x18d   :  { %v2897_v40 = vpop.eup %2896  ;;  %v2300_v61 = vmul.f32 0.6931472, %v2891_v10  ;;  %v2303_v24 = vmul.f32 %v3565_v49, %v2302_v13  ;;  %v2311_v30 = vadd.f32 1.0, %v2310_v54  ;;  %v3676_v29 = vmul.f32 %v2893_v25, %v3218_v20 }
 0x18e   :  { %v2899_v39 = vpop.eup %2898  ;;  %v3679_v48 = vadd.f32 %v2893_v25, %v3218_v20  ;;  %vm3681_vm15 = vcmp.lt.f32.partialorder %v2304_v27, 0.0004427343  ;;  %v2313_v22 = vand.u32 2147483647, %v3590_v2  ;;  %v3687_v28 = vadd.f32 %v1735_v17, %v3603_v37 }
 0x18f   :  { %v3690_v49 = vmul.f32 %v2895_v16, %v3220_v21  ;;  %v2016_v34 = vsel %vm3655_vm13, %v2013_v4, %v2010_v57  ;;  %v3695_v63 = vadd.f32 %v2895_v16, %v3220_v21  ;;  %v2025_v43 = vsel %vm3661_vm14, %v2022_v9, %v2019_v45 }
 0x190   :  { %v2901_v1 = vpop.eup %2900  ;;  %v3700_v59 = vmul.f32 %v2897_v40, %v3226_v23  ;;  %v2306_v13 = vsel %vm3681_vm15, %v2303_v24, %v2300_v61  ;;  %v2309_v54 = vmul.f32 0.6931472, %v2899_v39  ;;  %v2312_v10 = vmul.f32 %v3590_v2, %v2311_v30  ;;  %v3717_v2 = vld [vmem:[#allocation5 + $0x68] sm:$0xff]  ;;  %v2941_v39 = vld [vmem:[#allocation5 + $0x18] sm:$0xff] }
 0x191   :  { %v3706_v21 = vadd.f32 %v2016_v34, %v3637_v32  ;;  %v3709_v57 = vadd.f32 %v2897_v40, %v3226_v23  ;;  %vm3711_vm1 = vcmp.lt.f32.partialorder %v2313_v22, 0.0004427343  ;;  %v3715_v9 = vadd.f32 %v2025_v43, %v1999_v7  ;;  %v3729_v7 = vld [vmem:[#allocation5 + $0x70] sm:$0xff]  ;;  %v3734_v43 = vld [vmem:[#allocation5 + $0x78] sm:$0xff] }
 0x192   :  { %v2903_v26 = vpop.eup %2902  ;;  %v3720_v61 = vmul.f32 %v3717_v2, %v2901_v1  ;;  %v3723_v23 = vadd.f32 %v3717_v2, %v2901_v1  ;;  %v3725_v40 = vadd.f32 %v2306_v13, %v2288_v52  ;;  %v2315_v50 = vsel %vm3711_vm1, %v2312_v10, %v2309_v54 }
 0x193   :  { %v2905_v5 = vpop.eup %2904  ;;  %v3732_v22 = vmul.f32 %v3729_v7, %v2903_v26  ;;  %v3740_v1 = vadd.f32 %v3729_v7, %v2903_v26  ;;  %v3746_v4 = vadd.f32 %v2315_v50, %v3669_v58 }
 0x194   :  { %v3737_v52 = vmul.f32 %v3734_v43, %v2905_v5  ;;  %v3743_v10 = vadd.f32 %v3734_v43, %v2905_v5 }
 0x1f9   :  { %v2544_v18 = vpop.f32.mrb[0].mxu1 }
 0x1fa   :  { %v245_v6 = vmul.f32 0.0010405828, %v2544_v18  ;;  %v235_v38 = vpop.f32.mrb[1].mxu1 }
 0x1fb   :  { %v244_v20 = vmul.f32 0.0010405828, %v235_v38  ;;  %v2943_v38 = vld [vmem:[#allocation5 + $0x10] sm:$0xff] }
 0x1fc   :  { %v247_v37 = vsub.f32 %v245_v6, %v2938_v12 }
 0x1fd   :  { %v246_v27 = vsub.f32 %v244_v20, %v2939_v51  ;;  %v2558_v25 = vpop.f32.mrb[2].mxu1 }
 0x1fe   :  { %v249_v16 = vand.u32 2147483647, %v247_v37  ;;  %v535_v17 = vmul.f32 0.0010405828, %v2558_v25  ;;  %v525_v45 = vpop.f32.mrb[3].mxu1 }
 0x1ff   :  { %v248_v32 = vand.u32 2147483647, %v246_v27  ;;  %v534_v24 = vmul.f32 0.0010405828, %v525_v45 }
 0x200   :  { %v251_v30 = vmul.f32 5.0, %v249_v16  ;;  %v537_v18 = vsub.f32 %v535_v17, %v2941_v39  ;;  %v2945_v17 = vld [vmem:[#allocation5 + $0x28] sm:$0xff] }
 0x201   :  { %v250_v6 = vmul.f32 5.0, %v248_v32  ;;  %v536_v34 = vsub.f32 %v534_v24, %v2943_v38  ;;  %v2572_v20 = vpop.f32.mrb[4].mxu1 }
 0x202   :  { %v253_v12 = vadd.f32 1.0, %v251_v30  ;;  %v539_v37 = vand.u32 2147483647, %v537_v18  ;;  %v825_v13 = vmul.f32 0.0010405828, %v2572_v20  ;;  %v815_v54 = vpop.f32.mrb[5].mxu1 }
 0x203   :  { %v252_v51 = vadd.f32 1.0, %v250_v6  ;;  %v538_v27 = vand.u32 2147483647, %v536_v34  ;;  %v824_v25 = vmul.f32 0.0010405828, %v815_v54  ;;  %v2946_v30 = vld [vmem:[#allocation5 + $0x20] sm:$0xff] }
 0x204   :  { %v541_v16 = vmul.f32 5.0, %v539_v37  ;;  %v827_v45 = vsub.f32 %v825_v13, %v2945_v17  ;;  %v301_v32 = vsel %vm81_vm0, %v253_v12, 0.0  ;;  %v331_v26 = vmul.f32 %v3342_v31, %v253_v12 }
 0x205   :  { %v540_v24 = vmul.f32 5.0, %v538_v27  ;;  %v826_v39 = vsub.f32 %v824_v25, %v2946_v30  ;;  %v300_v18 = vsel %vm81_vm0, %v252_v51, 0.0  ;;  %v330_v5 = vmul.f32 %v3353_v44, %v252_v51  ;;  %v2586_v6 = vpop.f32.mrb[6].mxu1 }
 0x206   :  { %v543_v38 = vadd.f32 1.0, %v541_v16  ;;  %v829_v34 = vand.u32 2147483647, %v827_v45  ;;  %v302_v20 = vadd.f32 %v301_v32, %v300_v18  ;;  %v333_v58 = vsel %vm81_vm0, %v331_v26, 0.0  ;;  %v1105_v50 = vpop.f32.mrb[7].mxu1 }
 0x207   :  { %v542_v37 = vadd.f32 1.0, %v540_v24  ;;  %v828_v13 = vand.u32 2147483647, %v826_v39  ;;  %v332_v54 = vsel %vm81_vm0, %v330_v5, 0.0  ;;  %v313_v31 = vmul.f32 %v3372_v14, %v252_v51  ;;  %v2947_v14 = vld [vmem:[#allocation5 + $0x38] sm:$0xff] }
 0x208   :  { %v831_v27 = vmul.f32 5.0, %v829_v34  ;;  %303 = vadd.xlane.f32.xlu0 %v302_v20  ;;  %v334_v25 = vadd.f32 %v333_v58, %v332_v54  ;;  %v314_v17 = vmul.f32 %v3374_v15, %v253_v12  ;;  %v1115_v30 = vmul.f32 0.0010405828, %v2586_v6 }
 0x209   :  { %v830_v44 = vmul.f32 5.0, %v828_v13  ;;  %v315_v16 = vsel %vm81_vm0, %v313_v31, 0.0  ;;  %v347_v45 = vmul.f32 %v3383_v33, %v252_v51  ;;  %v348_v32 = vmul.f32 %v3387_v62, %v253_v12  ;;  %v2600_v26 = vpop.f32.mrb[8].mxu1  ;;  %v2948_v51 = vld [vmem:[#allocation5 + $0x30] sm:$0xff] }
 0x20a   :  { %v3759_v24 = vadd.f32 1.0, %v831_v27  ;;  %335 = vadd.xlane.f32.xlu1 %v334_v25  ;;  %v316_v39 = vsel %vm81_vm0, %v314_v17, 0.0  ;;  %v1117_v18 = vsub.f32 %v1115_v30, %v2947_v14  ;;  %v1114_v5 = vmul.f32 0.0010405828, %v1105_v50  ;;  %v1395_v34 = vpop.f32.mrb[9].mxu1 }
 0x20b   :  { %v832_v20 = vadd.f32 1.0, %v830_v44  ;;  %v317_v15 = vadd.f32 %v316_v39, %v315_v16  ;;  %v349_v6 = vsel %vm81_vm0, %v347_v45, 0.0  ;;  %v350_v58 = vsel %vm81_vm0, %v348_v32, 0.0 }
 0x20c   :  { %v1119_v13 = vand.u32 2147483647, %v1117_v18  ;;  %v351_v33 = vadd.f32 %v350_v58, %v349_v6  ;;  %v1116_v62 = vsub.f32 %v1114_v5, %v2948_v51  ;;  %v590_v12 = vsel %vm81_vm0, %v542_v37, 0.0  ;;  %v2949_v6 = vld [vmem:[#allocation5 + $0x48] sm:$0xff] }
 0x20d   :  { %318 = vadd.xlane.f32.xlu0 %v317_v15  ;;  %v591_v54 = vsel %vm81_vm0, %v543_v38, 0.0  ;;  %v603_v31 = vmul.f32 %v3394_v42, %v542_v37  ;;  %v604_v50 = vmul.f32 %v3444_v41, %v543_v38  ;;  %v620_v27 = vmul.f32 %v3397_v0, %v542_v37  ;;  %v2614_v25 = vpop.f32.mrb[10].mxu1 }
 0x20e   :  { %v1121_v17 = vmul.f32 5.0, %v1119_v13  ;;  %352 = vadd.xlane.f32.xlu1 %v351_v33  ;;  %v1118_v30 = vand.u32 2147483647, %v1116_v62  ;;  %v592_v44 = vadd.f32 %v591_v54, %v590_v12  ;;  %v621_v16 = vmul.f32 %v3425_v19, %v543_v38  ;;  %v1685_v45 = vpop.f32.mrb[11].mxu1 }
 0x20f   :  { %v605_v32 = vsel %vm81_vm0, %v603_v31, 0.0  ;;  %v606_v39 = vsel %vm81_vm0, %v604_v50, 0.0  ;;  %v622_v14 = vsel %vm81_vm0, %v620_v27, 0.0  ;;  %v1405_v18 = vmul.f32 0.0010405828, %v2600_v26 }
 0x210   :  { %v3773_v42 = vadd.f32 1.0, %v1121_v17  ;;  %v1120_v41 = vmul.f32 5.0, %v1118_v30  ;;  %v607_v5 = vadd.f32 %v606_v39, %v605_v32  ;;  %v623_v0 = vsel %vm81_vm0, %v621_v16, 0.0 }
 0x211   :  { %593 = vadd.xlane.f32.xlu0 %v592_v44  ;;  %v624_v15 = vadd.f32 %v623_v0, %v622_v14  ;;  %v1407_v58 = vsub.f32 %v1405_v18, %v2949_v6  ;;  %v637_v19 = vmul.f32 %v3404_v47, %v542_v37  ;;  %v638_v13 = vmul.f32 %v3436_v3, %v543_v38  ;;  %v2628_v33 = vpop.f32.mrb[12].mxu1  ;;  %v2950_v37 = vld [vmem:[#allocation5 + $0x40] sm:$0xff]  ;;  %v4000_v38 = vld [vmem:[#allocation15_spill] sm:$0xff]  ;;  %v4001_v0 = vld [vmem:[#allocation16_spill] sm:$0xff] }
 0x212   :  { %v1122_v51 = vadd.f32 1.0, %v1120_v41  ;;  %608 = vadd.xlane.f32.xlu1 %v607_v5  ;;  %v1404_v62 = vmul.f32 0.0010405828, %v1395_v34  ;;  %v880_v26 = vsel %vm81_vm0, %v832_v20, 0.0  ;;  %v881_v12 = vsel %vm81_vm0, %v3759_v24, 0.0  ;;  %v3781_v54 = vpop.f32.mrb[13].mxu1 }
 0x213   :  { %v1409_v31 = vand.u32 2147483647, %v1407_v58  ;;  %v639_v50 = vsel %vm81_vm0, %v637_v19, 0.0  ;;  %v640_v27 = vsel %vm81_vm0, %v638_v13, 0.0  ;;  %v882_v17 = vadd.f32 %v881_v12, %v880_v26  ;;  %v2951_v13 = vld [vmem:[#allocation5 + $0x58] sm:$0xff] }
 0x214   :  { %v641_v47 = vadd.f32 %v640_v27, %v639_v50  ;;  %v1406_v3 = vsub.f32 %v1404_v62, %v2950_v37  ;;  %v893_v30 = vmul.f32 %v4000_v38, %v832_v20  ;;  %v894_v34 = vmul.f32 %v3471_v55, %v3759_v24  ;;  %v4002_v26 = vld [vmem:[#allocation17_spill] sm:$0xff] }
 0x215   :  { %625 = vadd.xlane.f32.xlu0 %v624_v15  ;;  %v1411_v44 = vmul.f32 5.0, %v1409_v31  ;;  %v910_v16 = vmul.f32 %v3485_v56, %v832_v20  ;;  %v911_v32 = vmul.f32 %v3499_v60, %v3759_v24  ;;  %v1695_v39 = vmul.f32 0.0010405828, %v2614_v25  ;;  %v3791_v14 = vpop.f32.mrb[14].mxu1 }
 0x216   :  { %642 = vadd.xlane.f32.xlu1 %v641_v47  ;;  %v1408_v18 = vand.u32 2147483647, %v1406_v3  ;;  %v895_v41 = vsel %vm81_vm0, %v893_v30, 0.0  ;;  %v896_v5 = vsel %vm81_vm0, %v894_v34, 0.0  ;;  %v927_v6 = vmul.f32 %v4001_v0, %v832_v20  ;;  %v3796_v58 = vpop.f32.mrb[15].mxu1  ;;  %v2952_v34 = vld [vmem:[#allocation5 + $0x50] sm:$0xff] }
 0x217   :  { %v3798_v55 = vadd.f32 1.0, %v1411_v44  ;;  %v897_v15 = vadd.f32 %v896_v5, %v895_v41  ;;  %v912_v56 = vsel %vm81_vm0, %v910_v16, 0.0  ;;  %v913_v60 = vsel %vm81_vm0, %v911_v32, 0.0  ;;  %v4003_v16 = vld [vmem:[#allocation20_spill] sm:$0xff]  ;;  %v4006_v41 = vld [vmem:[#allocation21_spill] sm:$0xff] }
 0x218   :  { %v1410_v25 = vmul.f32 5.0, %v1408_v18  ;;  %v914_v19 = vadd.f32 %v913_v60, %v912_v56  ;;  %v1697_v62 = vsub.f32 %v1695_v39, %v2951_v13  ;;  %v928_v12 = vmul.f32 %v4002_v26, %v3759_v24  ;;  %v4005_v39 = vld [vmem:[#allocation18_spill] sm:$0xff]  ;;  %v4007_v60 = vld [vmem:[#allocation19_spill] sm:$0xff] }
 0x219   :  { %883 = vadd.xlane.f32.xlu0 %v882_v17  ;;  %v929_v31 = vsel %vm81_vm0, %v927_v6, 0.0  ;;  %v1694_v20 = vmul.f32 0.0010405828, %v1685_v45  ;;  %v1170_v50 = vsel %vm81_vm0, %v1122_v51, 0.0  ;;  %v1171_v27 = vsel %vm81_vm0, %v3773_v42, 0.0  ;;  %v4004_v17 = vld [vmem:[#allocation23_spill] sm:$0xff] }
 0x21a   :  { %v1412_v47 = vadd.f32 1.0, %v1410_v25  ;;  %898 = vadd.xlane.f32.xlu1 %v897_v15  ;;  %v1699_v37 = vand.u32 2147483647, %v1697_v62  ;;  %v930_v3 = vsel %vm81_vm0, %v928_v12, 0.0  ;;  %v1172_v38 = vadd.f32 %v1171_v27, %v1170_v50 }
 0x21b   :  { %v931_v30 = vadd.f32 %v930_v3, %v929_v31  ;;  %v1696_v44 = vsub.f32 %v1694_v20, %v2952_v34  ;;  %v1183_v24 = vmul.f32 %v4003_v16, %v1122_v51  ;;  %v1184_v32 = vmul.f32 %v4004_v17, %v3773_v42 }
 0x21c   :  { %v1701_v45 = vmul.f32 5.0, %v1699_v37  ;;  %v1200_v18 = vmul.f32 %v4005_v39, %v1122_v51  ;;  %v1201_v5 = vmul.f32 %v4006_v41, %v3773_v42  ;;  %v1985_v0 = vmul.f32 0.0010405828, %v2628_v33 }
 0x21d   :  { %915 = vadd.xlane.f32.xlu0 %v914_v19  ;;  %v1698_v6 = vand.u32 2147483647, %v1696_v44  ;;  %v1185_v15 = vsel %vm81_vm0, %v1183_v24, 0.0  ;;  %v1186_v56 = vsel %vm81_vm0, %v1184_v32, 0.0  ;;  %v1217_v25 = vmul.f32 %v4007_v60, %v1122_v51  ;;  %v4008_v19 = vld [vmem:[#allocation22_spill] sm:$0xff] }
 0x21e   :  { %v3818_v13 = vadd.f32 1.0, %v1701_v45  ;;  %932 = vadd.xlane.f32.xlu1 %v931_v30  ;;  %v1187_v62 = vadd.f32 %v1186_v56, %v1185_v15  ;;  %v1202_v26 = vsel %vm81_vm0, %v1200_v18, 0.0  ;;  %v1203_v12 = vsel %vm81_vm0, %v1201_v5, 0.0  ;;  %v2953_v24 = vld [vmem:[#allocation5 + $0x60] sm:$0xff]  ;;  %v4009_v45 = vld [vmem:[#allocation24_spill] sm:$0xff] }
 0x21f   :  { %v1700_v31 = vmul.f32 5.0, %v1698_v6  ;;  %v1204_v20 = vadd.f32 %v1203_v12, %v1202_v26  ;;  %v1987_v33 = vsub.f32 %v1985_v0, %v3717_v2  ;;  %v1218_v50 = vmul.f32 %v4008_v19, %v3773_v42 }
 0x220   :  { %v1219_v27 = vsel %vm81_vm0, %v1217_v25, 0.0  ;;  %v1984_v37 = vmul.f32 0.0010405828, %v3781_v54  ;;  %v1460_v51 = vsel %vm81_vm0, %v1412_v47, 0.0  ;;  %v1461_v3 = vsel %vm81_vm0, %v3798_v55, 0.0 }
 0x221   :  { %v1702_v30 = vadd.f32 1.0, %v1700_v31  ;;  %1173 = vadd.xlane.f32.xlu0 %v1172_v38  ;;  %v1989_v34 = vand.u32 2147483647, %v1987_v33  ;;  %v1220_v44 = vsel %vm81_vm0, %v1218_v50, 0.0  ;;  %v1462_v16 = vadd.f32 %v1461_v3, %v1460_v51 }
 0x222   :  { %1188 = vadd.xlane.f32.xlu1 %v1187_v62  ;;  %v1221_v2 = vadd.f32 %v1220_v44, %v1219_v27  ;;  %v1986_v17 = vsub.f32 %v1984_v37, %v2953_v24  ;;  %v1473_v42 = vmul.f32 %v3601_v53, %v1412_v47  ;;  %v1474_v54 = vmul.f32 %v3650_v11, %v3798_v55 }
 0x223   :  { %v1991_v32 = vmul.f32 5.0, %v1989_v34  ;;  %v1490_v39 = vmul.f32 %v4009_v45, %v1412_v47  ;;  %v1491_v18 = vmul.f32 %v3625_v46, %v3798_v55  ;;  %v2275_v38 = vmul.f32 0.0010405828, %v3791_v14 }
 0x224   :  { %v1988_v41 = vand.u32 2147483647, %v1986_v17  ;;  %v1475_v5 = vsel %vm81_vm0, %v1473_v42, 0.0  ;;  %v1476_v0 = vsel %vm81_vm0, %v1474_v54, 0.0  ;;  %v1507_v6 = vmul.f32 %v3596_v36, %v1412_v47 }
 0x225   :  { %1205 = vadd.xlane.f32.xlu0 %v1204_v20  ;;  %v1993_v53 = vadd.f32 1.0, %v1991_v32  ;;  %v1477_v15 = vadd.f32 %v1476_v0, %v1475_v5  ;;  %v1492_v11 = vsel %vm81_vm0, %v1490_v39, 0.0  ;;  %v1493_v56 = vsel %vm81_vm0, %v1491_v18, 0.0 }
 0x226   :  { %1222 = vadd.xlane.f32.xlu1 %v1221_v2  ;;  %v1990_v60 = vmul.f32 5.0, %v1988_v41  ;;  %v1494_v25 = vadd.f32 %v1493_v56, %v1492_v11  ;;  %v2277_v46 = vsub.f32 %v2275_v38, %v3734_v43  ;;  %v1508_v14 = vmul.f32 %v3631_v35, %v3798_v55 }
 0x227   :  { %v1509_v62 = vsel %vm81_vm0, %v1507_v6, 0.0  ;;  %v2274_v26 = vmul.f32 0.0010405828, %v3796_v58  ;;  %v1750_v36 = vsel %vm81_vm0, %v1702_v30, 0.0  ;;  %v1751_v47 = vsel %vm81_vm0, %v3818_v13, 0.0 }
 0x228   :  { %v1992_v12 = vadd.f32 1.0, %v1990_v60  ;;  %v2279_v31 = vand.u32 2147483647, %v2277_v46  ;;  %v1510_v20 = vsel %vm81_vm0, %v1508_v14, 0.0  ;;  %v1752_v33 = vadd.f32 %v1751_v47, %v1750_v36 }
 0x229   :  { %1463 = vadd.xlane.f32.xlu0 %v1462_v16  ;;  %v1511_v19 = vadd.f32 %v1510_v20, %v1509_v62  ;;  %v2276_v43 = vsub.f32 %v2274_v26, %v3729_v7  ;;  %v1763_v35 = vmul.f32 %v3672_v8, %v1702_v30  ;;  %v1764_v55 = vmul.f32 %v3687_v28, %v3818_v13 }
 0x22a   :  { %1478 = vadd.xlane.f32.xlu1 %v1477_v15  ;;  %v2281_v58 = vmul.f32 5.0, %v2279_v31  ;;  %v1780_v50 = vmul.f32 %v3676_v29, %v1702_v30  ;;  %v1781_v27 = vmul.f32 %v3690_v49, %v3818_v13  ;;  %v1797_v37 = vmul.f32 %v3679_v48, %v1702_v30 }
 0x22b   :  { %v2278_v51 = vand.u32 2147483647, %v2276_v43  ;;  %v1765_v3 = vsel %vm81_vm0, %v1763_v35, 0.0  ;;  %v1766_v34 = vsel %vm81_vm0, %v1764_v55, 0.0  ;;  %v1798_v8 = vmul.f32 %v3695_v63, %v3818_v13 }
 0x22c   :  { %v2283_v7 = vadd.f32 1.0, %v2281_v58  ;;  %v1767_v44 = vadd.f32 %v1766_v34, %v1765_v3  ;;  %v1782_v28 = vsel %vm81_vm0, %v1780_v50, 0.0  ;;  %v1783_v16 = vsel %vm81_vm0, %v1781_v27, 0.0 }
 0x22d   :  { %1495 = vadd.xlane.f32.xlu0 %v1494_v25  ;;  %v2280_v29 = vmul.f32 5.0, %v2278_v51  ;;  %v1784_v2 = vadd.f32 %v1783_v16, %v1782_v28  ;;  %v1799_v49 = vsel %vm81_vm0, %v1797_v37, 0.0  ;;  %v1800_v48 = vsel %vm81_vm0, %v1798_v8, 0.0 }
 0x22e   :  { %1512 = vadd.xlane.f32.xlu1 %v1511_v19  ;;  %v1801_v30 = vadd.f32 %v1800_v48, %v1799_v49  ;;  %v2040_v24 = vsel %vm81_vm0, %v1992_v12, 0.0  ;;  %v2041_v17 = vsel %vm81_vm0, %v1993_v53, 0.0  ;;  %v2053_v63 = vmul.f32 %v3706_v21, %v1992_v12 }
 0x22f   :  { %v2282_v13 = vadd.f32 1.0, %v2280_v29  ;;  %v2042_v42 = vadd.f32 %v2041_v17, %v2040_v24  ;;  %v2054_v54 = vmul.f32 %v3715_v9, %v1993_v53  ;;  %v2070_v32 = vmul.f32 %v3700_v59, %v1992_v12 }
 0x230   :  { %v2055_v45 = vsel %vm81_vm0, %v2053_v63, 0.0  ;;  %v2071_v39 = vmul.f32 %v3720_v61, %v1993_v53  ;;  %v2087_v18 = vmul.f32 %v3709_v57, %v1992_v12  ;;  %v2088_v38 = vmul.f32 %v3723_v23, %v1993_v53 }
 0x231   :  { %1753 = vadd.xlane.f32.xlu0 %v1752_v33  ;;  %v2056_v41 = vsel %vm81_vm0, %v2054_v54, 0.0  ;;  %v2072_v5 = vsel %vm81_vm0, %v2070_v32, 0.0  ;;  %v2330_v21 = vsel %vm81_vm0, %v2282_v13, 0.0  ;;  %v2331_v0 = vsel %vm81_vm0, %v2283_v7, 0.0 }
 0x232   :  { %1768 = vadd.xlane.f32.xlu1 %v1767_v44  ;;  %v2057_v9 = vadd.f32 %v2056_v41, %v2055_v45  ;;  %v2073_v59 = vsel %vm81_vm0, %v2071_v39, 0.0  ;;  %v2089_v6 = vsel %vm81_vm0, %v2087_v18, 0.0  ;;  %v2090_v61 = vsel %vm81_vm0, %v2088_v38, 0.0 }
 0x233   :  { %v2074_v57 = vadd.f32 %v2073_v59, %v2072_v5  ;;  %v2091_v15 = vadd.f32 %v2090_v61, %v2089_v6  ;;  %v2332_v23 = vadd.f32 %v2331_v0, %v2330_v21  ;;  %v2343_v53 = vmul.f32 %v3725_v40, %v2282_v13 }
 0x234   :  { %v2344_v11 = vmul.f32 %v3746_v4, %v2283_v7  ;;  %v2360_v56 = vmul.f32 %v3732_v22, %v2282_v13  ;;  %v2361_v60 = vmul.f32 %v3737_v52, %v2283_v7  ;;  %v2377_v25 = vmul.f32 %v3740_v1, %v2282_v13 }
 0x235   :  { %1785 = vadd.xlane.f32.xlu0 %v1784_v2  ;;  %v2345_v46 = vsel %vm81_vm0, %v2343_v53, 0.0  ;;  %v2378_v14 = vmul.f32 %v3743_v10, %v2283_v7 }
 0x236   :  { %1802 = vadd.xlane.f32.xlu1 %v1801_v30  ;;  %v2346_v62 = vsel %vm81_vm0, %v2344_v11, 0.0  ;;  %v2362_v26 = vsel %vm81_vm0, %v2360_v56, 0.0  ;;  %v2363_v40 = vsel %vm81_vm0, %v2361_v60, 0.0  ;;  %v2379_v4 = vsel %vm81_vm0, %v2377_v25, 0.0 }
 0x237   :  { %v2347_v36 = vadd.f32 %v2346_v62, %v2345_v46  ;;  %v2364_v22 = vadd.f32 %v2363_v40, %v2362_v26  ;;  %v2380_v52 = vsel %vm81_vm0, %v2378_v14, 0.0 }
 0x238   :  { %v2381_v47 = vadd.f32 %v2380_v52, %v2379_v4 }
 0x239   :  { %2043 = vadd.xlane.f32.xlu0 %v2042_v42 }
 0x23a   :  { %2058 = vadd.xlane.f32.xlu1 %v2057_v9 }
 0x23d   :  { %2075 = vadd.xlane.f32.xlu0 %v2074_v57 }
 0x23e   :  { %2092 = vadd.xlane.f32.xlu1 %v2091_v15 }
 0x241   :  { %2333 = vadd.xlane.f32.xlu0 %v2332_v23 }
 0x242   :  { %2348 = vadd.xlane.f32.xlu1 %v2347_v36 }
 0x245   :  { %2365 = vadd.xlane.f32.xlu0 %v2364_v22 }
 0x246   :  { %2382 = vadd.xlane.f32.xlu1 %v2381_v47 }
 0x295   :  { %v304_v1 = vpop.xlane.xlu0 %303 }
 0x296   :  { %v305_v10 = vrot.slane %v304_v1, 4 }
 0x297   :  { %v336_v12 = vpop.xlane.xlu1 %335 }
 0x298   :  { %v306_v31 = vadd.f32 %v305_v10, %v304_v1  ;;  %v337_v20 = vrot.slane %v336_v12, 4 }
 0x29a   :  { %v307_v33 = vrot.slane %v306_v31, 2  ;;  %v338_v19 = vadd.f32 %v337_v20, %v336_v12  ;;  %v319_v43 = vpop.xlane.xlu0 %318 }
 0x29b   :  { %v320_v35 = vrot.slane %v319_v43, 4  ;;  %v353_v55 = vpop.xlane.xlu1 %352 }
 0x29c   :  { %v339_v58 = vrot.slane %v338_v19, 2  ;;  %v354_v50 = vrot.slane %v353_v55, 4  ;;  %v308_v27 = vadd.f32 %v307_v33, %v306_v31 }
 0x29d   :  { %v321_v37 = vadd.f32 %v320_v35, %v319_v43 }
 0x29e   :  { %v355_v51 = vadd.f32 %v354_v50, %v353_v55  ;;  %v594_v3 = vpop.xlane.xlu0 %593  ;;  %v309_v34 = vrot.slane %v308_v27, 1  ;;  %v340_v8 = vadd.f32 %v339_v58, %v338_v19 }
 0x29f   :  { %v322_v7 = vrot.slane %v321_v37, 2  ;;  %v595_v44 = vrot.slane %v594_v3, 4  ;;  %v609_v28 = vpop.xlane.xlu1 %608 }
 0x2a0   :  { %v356_v16 = vrot.slane %v355_v51, 2  ;;  %v610_v29 = vrot.slane %v609_v28, 4  ;;  %v310_v2 = vadd.f32 %v309_v34, %v308_v27  ;;  %v341_v17 = vrot.slane %v340_v8, 1 }
 0x2a1   :  { %v596_v49 = vadd.f32 %v595_v44, %v594_v3  ;;  %v323_v48 = vadd.f32 %v322_v7, %v321_v37 }
 0x2a2   :  { %v611_v30 = vadd.f32 %v610_v29, %v609_v28  ;;  %v626_v24 = vpop.xlane.xlu0 %625  ;;  %2707 = vpush %v310_v2  ;;  %v357_v63 = vadd.f32 %v356_v16, %v355_v51  ;;  %v342_v9 = vadd.f32 %v341_v17, %v340_v8 }
 0x2a3   :  { %v597_v13 = vrot.slane %v596_v49, 2  ;;  %v627_v42 = vrot.slane %v626_v24, 4  ;;  %v643_v54 = vpop.xlane.xlu1 %642  ;;  %v324_v32 = vrot.slane %v323_v48, 1 }
 0x2a4   :  { %v612_v45 = vrot.slane %v611_v30, 2  ;;  %v644_v39 = vrot.slane %v643_v54, 4  ;;  %v358_v18 = vrot.slane %v357_v63, 1 }
 0x2a5   :  { %v628_v38 = vadd.f32 %v627_v42, %v626_v24  ;;  %v325_v41 = vadd.f32 %v324_v32, %v323_v48  ;;  %v598_v5 = vadd.f32 %v597_v13, %v596_v49 }
 0x2a6   :  { %v645_v21 = vadd.f32 %v644_v39, %v643_v54  ;;  %v884_v0 = vpop.xlane.xlu0 %883  ;;  %v359_v59 = vadd.f32 %v358_v18, %v357_v63  ;;  %v613_v6 = vadd.f32 %v612_v45, %v611_v30 }
 0x2a7   :  { %v629_v61 = vrot.slane %v628_v38, 2  ;;  %v885_v57 = vrot.slane %v884_v0, 4  ;;  %2709 = vpush %v325_v41  ;;  %v899_v15 = vpop.xlane.xlu1 %898  ;;  %v599_v23 = vrot.slane %v598_v5, 1 }
 0x2a8   :  { %v646_v53 = vrot.slane %v645_v21, 2  ;;  %2711 = vpush %v342_v9  ;;  %v900_v11 = vrot.slane %v899_v15, 4  ;;  %v614_v56 = vrot.slane %v613_v6, 1 }
 0x2a9   :  { %v886_v60 = vadd.f32 %v885_v57, %v884_v0  ;;  %2713 = vpush %v359_v59  ;;  %v600_v25 = vadd.f32 %v599_v23, %v598_v5  ;;  %v630_v46 = vadd.f32 %v629_v61, %v628_v38 }
 0x2aa   :  { %v901_v14 = vadd.f32 %v900_v11, %v899_v15  ;;  %v916_v62 = vpop.xlane.xlu0 %915  ;;  %v615_v26 = vadd.f32 %v614_v56, %v613_v6  ;;  %v647_v40 = vadd.f32 %v646_v53, %v645_v21 }
 0x2ab   :  { %v887_v4 = vrot.slane %v886_v60, 2  ;;  %v917_v36 = vrot.slane %v916_v62, 4  ;;  %2715 = vpush %v600_v25  ;;  %v933_v22 = vpop.xlane.xlu1 %932  ;;  %v631_v52 = vrot.slane %v630_v46, 1 }
 0x2ac   :  { %v902_v47 = vrot.slane %v901_v14, 2  ;;  %v934_v1 = vrot.slane %v933_v22, 4  ;;  %2717 = vpush %v615_v26  ;;  %v648_v10 = vrot.slane %v647_v40, 1 }
 0x2ad   :  { %v918_v12 = vadd.f32 %v917_v36, %v916_v62  ;;  %v632_v31 = vadd.f32 %v631_v52, %v630_v46  ;;  %v888_v20 = vadd.f32 %v887_v4, %v886_v60 }
 0x2ae   :  { %v935_v33 = vadd.f32 %v934_v1, %v933_v22  ;;  %v1174_v19 = vpop.xlane.xlu0 %1173  ;;  %v649_v43 = vadd.f32 %v648_v10, %v647_v40  ;;  %v903_v35 = vadd.f32 %v902_v47, %v901_v14 }
 0x2af   :  { %v919_v55 = vrot.slane %v918_v12, 2  ;;  %v1175_v58 = vrot.slane %v1174_v19, 4  ;;  %2719 = vpush %v632_v31  ;;  %v1189_v50 = vpop.xlane.xlu1 %1188  ;;  %v889_v27 = vrot.slane %v888_v20, 1 }
 0x2b0   :  { %v936_v37 = vrot.slane %v935_v33, 2  ;;  %v1190_v51 = vrot.slane %v1189_v50, 4  ;;  %2721 = vpush %v649_v43  ;;  %v904_v3 = vrot.slane %v903_v35, 1 }
 0x2b1   :  { %v1176_v34 = vadd.f32 %v1175_v58, %v1174_v19  ;;  %v890_v8 = vadd.f32 %v889_v27, %v888_v20  ;;  %v920_v7 = vadd.f32 %v919_v55, %v918_v12 }
 0x2b2   :  { %v1191_v44 = vadd.f32 %v1190_v51, %v1189_v50  ;;  %v1206_v28 = vpop.xlane.xlu0 %1205  ;;  %v905_v16 = vadd.f32 %v904_v3, %v903_v35  ;;  %v937_v29 = vadd.f32 %v936_v37, %v935_v33 }
 0x2b3   :  { %v1177_v2 = vrot.slane %v1176_v34, 2  ;;  %v1207_v49 = vrot.slane %v1206_v28, 4  ;;  %2723 = vpush %v890_v8  ;;  %v1223_v48 = vpop.xlane.xlu1 %1222  ;;  %v921_v30 = vrot.slane %v920_v7, 1 }
 0x2b4   :  { %v1192_v24 = vrot.slane %v1191_v44, 2  ;;  %v1224_v17 = vrot.slane %v1223_v48, 4  ;;  %2725 = vpush %v905_v16  ;;  %v938_v63 = vrot.slane %v937_v29, 1 }
 0x2b5   :  { %v1208_v13 = vadd.f32 %v1207_v49, %v1206_v28  ;;  %v922_v42 = vadd.f32 %v921_v30, %v920_v7  ;;  %v1178_v54 = vadd.f32 %v1177_v2, %v1176_v34 }
 0x2b6   :  { %v1225_v32 = vadd.f32 %v1224_v17, %v1223_v48  ;;  %v1464_v45 = vpop.xlane.xlu0 %1463  ;;  %v939_v39 = vadd.f32 %v938_v63, %v937_v29  ;;  %v1193_v18 = vadd.f32 %v1192_v24, %v1191_v44 }
 0x2b7   :  { %v1209_v38 = vrot.slane %v1208_v13, 2  ;;  %v1465_v41 = vrot.slane %v1464_v45, 4  ;;  %2727 = vpush %v922_v42  ;;  %v1479_v5 = vpop.xlane.xlu1 %1478  ;;  %v1179_v21 = vrot.slane %v1178_v54, 1 }
 0x2b8   :  { %v1226_v0 = vrot.slane %v1225_v32, 2  ;;  %v1480_v9 = vrot.slane %v1479_v5, 4  ;;  %2729 = vpush %v939_v39  ;;  %v1194_v59 = vrot.slane %v1193_v18, 1 }
 0x2b9   :  { %v1466_v6 = vadd.f32 %v1465_v41, %v1464_v45  ;;  %v1180_v61 = vadd.f32 %v1179_v21, %v1178_v54  ;;  %v1210_v57 = vadd.f32 %v1209_v38, %v1208_v13 }
 0x2ba   :  { %v1481_v15 = vadd.f32 %v1480_v9, %v1479_v5  ;;  %v1496_v23 = vpop.xlane.xlu0 %1495  ;;  %v1195_v53 = vadd.f32 %v1194_v59, %v1193_v18  ;;  %v1227_v11 = vadd.f32 %v1226_v0, %v1225_v32 }
 0x2bb   :  { %v1467_v56 = vrot.slane %v1466_v6, 2  ;;  %v1497_v60 = vrot.slane %v1496_v23, 4  ;;  %2731 = vpush %v1180_v61  ;;  %v1513_v25 = vpop.xlane.xlu1 %1512  ;;  %v1211_v46 = vrot.slane %v1210_v57, 1 }
 0x2bc   :  { %v1482_v14 = vrot.slane %v1481_v15, 2  ;;  %v1514_v62 = vrot.slane %v1513_v25, 4  ;;  %2733 = vpush %v1195_v53  ;;  %v1228_v26 = vrot.slane %v1227_v11, 1 }
 0x2bd   :  { %v1498_v40 = vadd.f32 %v1497_v60, %v1496_v23  ;;  %v1212_v4 = vadd.f32 %v1211_v46, %v1210_v57  ;;  %v1468_v36 = vadd.f32 %v1467_v56, %v1466_v6 }
 0x2be   :  { %v1515_v22 = vadd.f32 %v1514_v62, %v1513_v25  ;;  %v1754_v52 = vpop.xlane.xlu0 %1753  ;;  %v1229_v47 = vadd.f32 %v1228_v26, %v1227_v11  ;;  %v1483_v1 = vadd.f32 %v1482_v14, %v1481_v15 }
 0x2bf   :  { %v1499_v10 = vrot.slane %v1498_v40, 2  ;;  %v1755_v12 = vrot.slane %v1754_v52, 4  ;;  %2735 = vpush %v1212_v4  ;;  %v1769_v31 = vpop.xlane.xlu1 %1768  ;;  %v1469_v20 = vrot.slane %v1468_v36, 1 }
 0x2c0   :  { %v1516_v33 = vrot.slane %v1515_v22, 2  ;;  %v1770_v19 = vrot.slane %v1769_v31, 4  ;;  %2737 = vpush %v1229_v47  ;;  %v1484_v43 = vrot.slane %v1483_v1, 1 }
 0x2c1   :  { %v1756_v35 = vadd.f32 %v1755_v12, %v1754_v52  ;;  %v1470_v55 = vadd.f32 %v1469_v20, %v1468_v36  ;;  %v1500_v58 = vadd.f32 %v1499_v10, %v1498_v40 }
 0x2c2   :  { %v1771_v50 = vadd.f32 %v1770_v19, %v1769_v31  ;;  %v1786_v27 = vpop.xlane.xlu0 %1785  ;;  %v1485_v37 = vadd.f32 %v1484_v43, %v1483_v1  ;;  %v1517_v51 = vadd.f32 %v1516_v33, %v1515_v22 }
 0x2c3   :  { %v1757_v3 = vrot.slane %v1756_v35, 2  ;;  %v1787_v34 = vrot.slane %v1786_v27, 4  ;;  %2739 = vpush %v1470_v55  ;;  %v1803_v8 = vpop.xlane.xlu1 %1802  ;;  %v1501_v7 = vrot.slane %v1500_v58, 1 }
 0x2c4   :  { %v1772_v44 = vrot.slane %v1771_v50, 2  ;;  %v1804_v28 = vrot.slane %v1803_v8, 4  ;;  %2741 = vpush %v1485_v37  ;;  %v1518_v16 = vrot.slane %v1517_v51, 1 }
 0x2c5   :  { %v1788_v29 = vadd.f32 %v1787_v34, %v1786_v27  ;;  %v1502_v2 = vadd.f32 %v1501_v7, %v1500_v58  ;;  %v1758_v49 = vadd.f32 %v1757_v3, %v1756_v35 }
 0x2c6   :  { %v1805_v48 = vadd.f32 %v1804_v28, %v1803_v8  ;;  %v2044_v30 = vpop.xlane.xlu0 %2043  ;;  %v1519_v24 = vadd.f32 %v1518_v16, %v1517_v51  ;;  %v1773_v17 = vadd.f32 %v1772_v44, %v1771_v50 }
 0x2c7   :  { %v1789_v63 = vrot.slane %v1788_v29, 2  ;;  %v2045_v13 = vrot.slane %v2044_v30, 4  ;;  %2743 = vpush %v1502_v2  ;;  %v2059_v42 = vpop.xlane.xlu1 %2058  ;;  %v1759_v54 = vrot.slane %v1758_v49, 1 }
 0x2c8   :  { %v1806_v32 = vrot.slane %v1805_v48, 2  ;;  %v2060_v45 = vrot.slane %v2059_v42, 4  ;;  %2745 = vpush %v1519_v24  ;;  %v1774_v39 = vrot.slane %v1773_v17, 1 }
 0x2c9   :  { %v2046_v18 = vadd.f32 %v2045_v13, %v2044_v30  ;;  %v1760_v38 = vadd.f32 %v1759_v54, %v1758_v49  ;;  %v1790_v41 = vadd.f32 %v1789_v63, %v1788_v29 }
 0x2ca   :  { %v2061_v5 = vadd.f32 %v2060_v45, %v2059_v42  ;;  %v2076_v21 = vpop.xlane.xlu0 %2075  ;;  %v1775_v0 = vadd.f32 %v1774_v39, %v1773_v17  ;;  %v1807_v9 = vadd.f32 %v1806_v32, %v1805_v48 }
 0x2cb   :  { %v2047_v59 = vrot.slane %v2046_v18, 2  ;;  %v2077_v6 = vrot.slane %v2076_v21, 4  ;;  %2747 = vpush %v1760_v38  ;;  %v2093_v61 = vpop.xlane.xlu1 %2092  ;;  %v1791_v57 = vrot.slane %v1790_v41, 1 }
 0x2cc   :  { %v2062_v15 = vrot.slane %v2061_v5, 2  ;;  %v2094_v23 = vrot.slane %v2093_v61, 4  ;;  %2749 = vpush %v1775_v0  ;;  %v1808_v53 = vrot.slane %v1807_v9, 1 }
 0x2cd   :  { %v2078_v11 = vadd.f32 %v2077_v6, %v2076_v21  ;;  %v1792_v56 = vadd.f32 %v1791_v57, %v1790_v41  ;;  %v2048_v60 = vadd.f32 %v2047_v59, %v2046_v18 }
 0x2ce   :  { %v2095_v25 = vadd.f32 %v2094_v23, %v2093_v61  ;;  %v2334_v46 = vpop.xlane.xlu0 %2333  ;;  %v1809_v14 = vadd.f32 %v1808_v53, %v1807_v9  ;;  %v2063_v62 = vadd.f32 %v2062_v15, %v2061_v5 }
 0x2cf   :  { %v2079_v26 = vrot.slane %v2078_v11, 2  ;;  %v2335_v40 = vrot.slane %v2334_v46, 4  ;;  %2751 = vpush %v1792_v56  ;;  %v2349_v4 = vpop.xlane.xlu1 %2348  ;;  %v2049_v36 = vrot.slane %v2048_v60, 1 }
 0x2d0   :  { %v2096_v22 = vrot.slane %v2095_v25, 2  ;;  %v2350_v52 = vrot.slane %v2349_v4, 4  ;;  %2753 = vpush %v1809_v14  ;;  %v2064_v47 = vrot.slane %v2063_v62, 1 }
 0x2d1   :  { %v2336_v1 = vadd.f32 %v2335_v40, %v2334_v46  ;;  %v2050_v10 = vadd.f32 %v2049_v36, %v2048_v60  ;;  %v2080_v12 = vadd.f32 %v2079_v26, %v2078_v11 }
 0x2d2   :  { %v2351_v31 = vadd.f32 %v2350_v52, %v2349_v4  ;;  %v2366_v20 = vpop.xlane.xlu0 %2365  ;;  %v2065_v33 = vadd.f32 %v2064_v47, %v2063_v62  ;;  %v2097_v19 = vadd.f32 %v2096_v22, %v2095_v25 }
 0x2d3   :  { %v2337_v43 = vrot.slane %v2336_v1, 2  ;;  %v2367_v35 = vrot.slane %v2366_v20, 4  ;;  %2755 = vpush %v2050_v10  ;;  %v2383_v55 = vpop.xlane.xlu1 %2382  ;;  %v2081_v58 = vrot.slane %v2080_v12, 1  ;;  %s2708_s3 = spop %2707 }
 0x2d4   :  { %v2352_v50 = vrot.slane %v2351_v31, 2  ;;  %v2384_v27 = vrot.slane %v2383_v55, 4  ;;  %2757 = vpush %v2065_v33  ;;  %v2098_v37 = vrot.slane %v2097_v19, 1  ;;  %v312_v42 = vstv %s2708_s3 }
 0x2d5   :  { %v2368_v51 = vadd.f32 %v2367_v35, %v2366_v20  ;;  %v2082_v3 = vadd.f32 %v2081_v58, %v2080_v12  ;;  %v2338_v34 = vadd.f32 %v2337_v43, %v2336_v1  ;;  %2906 = vrcp.f32 %v312_v42 }
 0x2d6   :  { %v2385_v8 = vadd.f32 %v2384_v27, %v2383_v55  ;;  %v2099_v7 = vadd.f32 %v2098_v37, %v2097_v19  ;;  %v2353_v44 = vadd.f32 %v2352_v50, %v2351_v31 }
 0x2d7   :  { %v2369_v28 = vrot.slane %v2368_v51, 2  ;;  %2759 = vpush %v2082_v3  ;;  %v2339_v16 = vrot.slane %v2338_v34, 1 }
 0x2d8   :  { %v2386_v29 = vrot.slane %v2385_v8, 2  ;;  %s3896_s27 = spop %2709  ;;  %2761 = vpush %v2099_v7  ;;  %v2354_v2 = vrot.slane %v2353_v44, 1 }
 0x2d9   :  { %v2370_v49 = vadd.f32 %v2369_v28, %v2368_v51  ;;  %s3898_s28 = spop %2711  ;;  %v2340_v48 = vadd.f32 %v2339_v16, %v2338_v34  ;;  %v327_v11 = vstv %s3896_s27 }
 0x2da   :  { %v2387_v30 = vadd.f32 %v2386_v29, %v2385_v8  ;;  %s2714_s12 = spop %2713  ;;  %v2355_v24 = vadd.f32 %v2354_v2, %v2353_v44  ;;  %v344_v17 = vstv %s3898_s28  ;;  %s3078_s28 = smov [#allocation10]  }
 0x2db   :  { %v361_v63 = vstv %s2714_s12  ;;  %2763 = vpush %v2340_v48  ;;  %v2371_v13 = vrot.slane %v2370_v49, 1  ;;  %v364_v59 = vadd.f32 1.0, %v344_v17  ;;  %s2408_s12 = sshll.u32 %s3078_s28, 4  ;;  %s2409_s12 = int_to_ptr.vmem [resolvable:$true] %s2408_s12 }
 0x2dc   :  { %v365_v54 = vsub.f32 %v361_v63, %v344_v17  ;;  %2765 = vpush %v2355_v24  ;;  %v2388_v32 = vrot.slane %v2387_v30, 1  ;;  %s2716_s1 = spop %2715  ;;  %p3047_p5 = scmp.lt.s32.totalorder %s2409_s12, %s2409_s12 }
 0x2dd   :  { %v2372_v45 = vadd.f32 %v2371_v13, %v2370_v49  ;;  %s3901_s13 = spop %2717  ;;  %v602_v5 = vstv %s2716_s1  ;;  %s3042_s1 = scalar_lea.vmem %s2409_s12, 128 }
 0x2de   :  { %v366_v39 = vadd.f32 1.0, %v365_v54  ;;  %v2389_v18 = vadd.f32 %v2388_v32, %v2387_v30  ;;  %v617_v22 = vstv %s3901_s13  ;;  %p3043_p4 = scmp.ne.s32.totalorder %s2409_s12, %s3042_s1  ;;  %p3048_p6 = scmp.lt.s32.totalorder %s3042_s1, %s3042_s1 }
 0x2df   :  { %2767 = vpush %v2372_v45  ;;  %v2907_v9 = vpop.eup %2906 }
 0x2e0   :  { %2908 = vrcp.f32 %v366_v39  ;;  %s3903_s14 = spop %2719  ;;  %2769 = vpush %v2389_v18  ;;  %v363_v56 = vmul.f32 %v2907_v9, %v327_v11  ;;  %p3049_p7 = por %p3048_p6, %p3047_p5 }
 0x2e1   :  { %s2722_s15 = spop %2721  ;;  %v634_v38 = vstv %s3903_s14  ;;  %2910 = vrcp.f32 %v602_v5 }
 0x2e2   :  { %v651_v41 = vstv %s2722_s15  ;;  %v654_v62 = vadd.f32 1.0, %v634_v38  ;;  %p3050_p8 = pnand %p3049_p7, %p3043_p4 }
 0x2e3   :  { %v655_v21 = vsub.f32 %v651_v41, %v634_v38 }
 0x2e4   :  { %s2724_s16 = spop %2723 }
 0x2e5   :  { %v656_v0 = vadd.f32 1.0, %v655_v21  ;;  %s3906_s17 = spop %2725  ;;  %v892_v23 = vstv %s2724_s16 }
 0x2e6   :  { %v907_v58 = vstv %s3906_s17 }
 0x2e7   :  { %2912 = vrcp.f32 %v656_v0 }
 0x2e8   :  { %s3908_s19 = spop %2727  ;;  %2914 = vrcp.f32 %v892_v23 }
 0x2e9   :  { %s2730_s20 = spop %2729  ;;  %v924_v61 = vstv %s3908_s19 }
 0x2ea   :  { %v2909_v6 = vpop.eup %2908  ;;  %v941_v57 = vstv %s2730_s20  ;;  %v944_v33 = vadd.f32 1.0, %v924_v61 }
 0x2eb   :  { %v368_v15 = vmul.f32 %v2909_v6, %v364_v59  ;;  %v945_v53 = vsub.f32 %v941_v57, %v924_v61  ;;  %v2911_v14 = vpop.eup %2910 }
 0x2ec   :  { %s2732_s21 = spop %2731  ;;  %v653_v1 = vmul.f32 %v2911_v14, %v617_v22 }
 0x2ed   :  { %v369_v60 = vsub.f32 1.0, %v368_v15  ;;  %v946_v25 = vadd.f32 1.0, %v945_v53  ;;  %s3912_s22 = spop %2733  ;;  %v1182_v52 = vstv %s2732_s21 }
 0x2ee   :  { %v1197_v2 = vstv %s3912_s22 }
 0x2ef   :  { %v370_v46 = vadd.f32 %v369_v60, %v363_v56  ;;  %2916 = vrcp.f32 %v946_v25 }
 0x2f0   :  { %s3914_s23 = spop %2735  ;;  %2918 = vrcp.f32 %v1182_v52 }
 0x2f1   :  { %v2913_v26 = vpop.eup %2912  ;;  %371 = vst [vmem:[#allocation10] sm:$0x1] %v370_v46  ;;  %s2738_s24 = spop %2737  ;;  %v1214_v4 = vstv %s3914_s23 }
 0x2f2   :  { %v658_v40 = vmul.f32 %v2913_v26, %v654_v62  ;;  %v1231_v36 = vstv %s2738_s24  ;;  %v2915_v20 = vpop.eup %2914  ;;  %v1234_v7 = vadd.f32 1.0, %v1214_v4 }
 0x2f3   :  { %v1235_v47 = vsub.f32 %v1231_v36, %v1214_v4  ;;  %v943_v37 = vmul.f32 %v2915_v20, %v907_v58 }
 0x2f4   :  { %v659_v10 = vsub.f32 1.0, %v658_v40  ;;  %s2740_s25 = spop %2739 }
 0x2f5   :  { %v1236_v12 = vadd.f32 1.0, %v1235_v47  ;;  %s3918_s0 = spop %2741  ;;  %v1472_v50 = vstv %s2740_s25 }
 0x2f6   :  { %v660_v31 = vadd.f32 %v659_v10, %v653_v1  ;;  %v1487_v18 = vstv %s3918_s0 }
 0x2f7   :  { %2920 = vrcp.f32 %v1236_v12 }
 0x2f8   :  { %661 = vst [vmem:[#allocation10 + $0x1] sm:$0x1] %v660_v31  ;;  %s3920_s18 = spop %2743  ;;  %2922 = vrcp.f32 %v1472_v50 }
 0x2f9   :  { %v2917_v19 = vpop.eup %2916  ;;  %s2746_s26 = spop %2745  ;;  %v1504_v35 = vstv %s3920_s18 }
 0x2fa   :  { %v948_v43 = vmul.f32 %v2917_v19, %v944_v33  ;;  %v1521_v55 = vstv %s2746_s26  ;;  %v2919_v8 = vpop.eup %2918  ;;  %v1524_v42 = vadd.f32 1.0, %v1504_v35 }
 0x2fb   :  { %v1525_v27 = vsub.f32 %v1521_v55, %v1504_v35  ;;  %v1233_v30 = vmul.f32 %v2919_v8, %v1197_v2 }
 0x2fc   :  { %v949_v51 = vsub.f32 1.0, %v948_v43  ;;  %s2748_s29 = spop %2747 }
 0x2fd   :  { %v1526_v3 = vadd.f32 1.0, %v1525_v27  ;;  %s3924_s30 = spop %2749  ;;  %v1762_v49 = vstv %s2748_s29 }
 0x2fe   :  { %v950_v34 = vadd.f32 %v949_v51, %v943_v37  ;;  %v1777_v53 = vstv %s3924_s30 }
 0x2ff   :  { %2924 = vrcp.f32 %v1526_v3 }
 0x300   :  { %951 = vst [vmem:[#allocation10 + $0x2] sm:$0x1] %v950_v34  ;;  %s3926_s5 = spop %2751  ;;  %2926 = vrcp.f32 %v1762_v49 }
 0x301   :  { %v2921_v44 = vpop.eup %2920  ;;  %s2754_s6 = spop %2753  ;;  %v1794_v16 = vstv %s3926_s5 }
 0x302   :  { %v1238_v28 = vmul.f32 %v2921_v44, %v1234_v7  ;;  %v1811_v29 = vstv %s2754_s6  ;;  %v2923_v13 = vpop.eup %2922  ;;  %v1814_v6 = vadd.f32 1.0, %v1794_v16 }
 0x303   :  { %v1815_v48 = vsub.f32 %v1811_v29, %v1794_v16  ;;  %v1523_v5 = vmul.f32 %v2923_v13, %v1487_v18 }
 0x304   :  { %v1239_v24 = vsub.f32 1.0, %v1238_v28  ;;  %s2756_s7 = spop %2755 }
 0x305   :  { %v1816_v17 = vadd.f32 1.0, %v1815_v48  ;;  %s3930_s8 = spop %2757  ;;  %v2052_v38 = vstv %s2756_s7 }
 0x306   :  { %v1240_v63 = vadd.f32 %v1239_v24, %v1233_v30  ;;  %v2067_v36 = vstv %s3930_s8 }
 0x307   :  { %2928 = vrcp.f32 %v1816_v17 }
 0x308   :  { %1241 = vst [vmem:[#allocation10 + $0x3] sm:$0x1] %v1240_v63  ;;  %s3932_s9 = spop %2759  ;;  %2930 = vrcp.f32 %v2052_v38 }
 0x309   :  { %v2925_v54 = vpop.eup %2924  ;;  %s2762_s10 = spop %2761  ;;  %v2084_v45 = vstv %s3932_s9 }
 0x30a   :  { %v1528_v32 = vmul.f32 %v2925_v54, %v1524_v42  ;;  %v2101_v39 = vstv %s2762_s10  ;;  %v2927_v59 = vpop.eup %2926  ;;  %v2104_v26 = vadd.f32 1.0, %v2084_v45 }
 0x30b   :  { %v2105_v41 = vsub.f32 %v2101_v39, %v2084_v45  ;;  %v1813_v60 = vmul.f32 %v2927_v59, %v1777_v53 }
 0x30c   :  { %v1529_v21 = vsub.f32 1.0, %v1528_v32  ;;  %s2764_s2 = spop %2763 }
 0x30d   :  { %v2106_v0 = vadd.f32 1.0, %v2105_v41  ;;  %s3936_s11 = spop %2765  ;;  %v2342_v11 = vstv %s2764_s2 }
 0x30e   :  { %v1530_v9 = vadd.f32 %v1529_v21, %v1523_v5  ;;  %v2357_v20 = vstv %s3936_s11 }
 0x30f   :  { %2932 = vrcp.f32 %v2106_v0 }
 0x310   :  { %1531 = vst [vmem:[#allocation10 + $0x4] sm:$0x1] %v1530_v9  ;;  %s2768_s3 = spop %2767  ;;  %2934 = vrcp.f32 %v2342_v11 }
 0x311   :  { %v2929_v61 = vpop.eup %2928  ;;  %s2770_s27 = spop %2769  ;;  %v2374_v15 = vstv %s2768_s3 }
 0x312   :  { %v1818_v57 = vmul.f32 %v2929_v61, %v1814_v6  ;;  %v2391_v23 = vstv %s2770_s27  ;;  %v2931_v62 = vpop.eup %2930  ;;  %v2394_v10 = vadd.f32 1.0, %v2374_v15 }
 0x313   :  { %v2395_v56 = vsub.f32 %v2391_v23, %v2374_v15  ;;  %v2103_v22 = vmul.f32 %v2931_v62, %v2067_v36 }
 0x314   :  { %v1819_v25 = vsub.f32 1.0, %v1818_v57 }
 0x315   :  { %v2396_v46 = vadd.f32 1.0, %v2395_v56 }
 0x316   :  { %v1820_v14 = vadd.f32 %v1819_v25, %v1813_v60 }
 0x317   :  { %2936 = vrcp.f32 %v2396_v46 }
 0x318   :  { %1821 = vst [vmem:[#allocation10 + $0x5] sm:$0x1] %v1820_v14 }
 0x319   :  { %v2933_v40 = vpop.eup %2932 }
 0x31a   :  { %v2108_v4 = vmul.f32 %v2933_v40, %v2104_v26  ;;  %v2935_v1 = vpop.eup %2934 }
 0x31b   :  { %v2393_v33 = vmul.f32 %v2935_v1, %v2357_v20 }
 0x31c   :  { %v2109_v52 = vsub.f32 1.0, %v2108_v4 }
 0x31e   :  { %v2110_v47 = vadd.f32 %v2109_v52, %v2103_v22 }
 0x320   :  { %2111 = vst [vmem:[#allocation10 + $0x6] sm:$0x1] %v2110_v47 }
 0x321   :  { %v2937_v12 = vpop.eup %2936 }
 0x322   :  { %v2398_v31 = vmul.f32 %v2937_v12, %v2394_v10 }
 0x324   :  { %v2399_v19 = vsub.f32 1.0, %v2398_v31 }
 0x326   :  { %v2400_v43 = vadd.f32 %v2399_v19, %v2393_v33 }
 0x328   :  { %2401 = vst [vmem:[#allocation10 + $0x7] sm:$0x1] %v2400_v43 }
 0x329   :  { %3053 = shalt.err (!%p3050_p8)
}
 0x32a   :  { %s3054_s15 = scalar_lea.hbm %s3957_s4, 128 }
 0x32b   :  { %p3055_p9 = scmp.ne.s32.totalorder %s3957_s4, %s3054_s15  ;;  %p3058_p10 = scmp.lt.u32.totalorder %s3054_s15, %s3957_s4 }
 0x32d   :  { %p3060_p11 = pnand %p3058_p10, %p3055_p9 }
 0x32f   :  { %3063 = shalt.err (!%p3060_p11)
}
 0x330   :  { %2411 = dma.vmem_to_hbm [thread:$0]  %s2409_s12, 128, %s3957_s4, [#allocation4]  }
 0x331   :  { %3070 = dma.done.wait [#allocation4], 128  }
 0x332   :  { %3071 = vsyncadd [#allocation4], 4294967168 }
 0x333   :  { %2415 = vsyncpa [#allocation3], 1 }
 0x334   :  { %2416 = vsyncpa [#allocation6], 1 }
 0x335   :  { %2417 = vsyncpa [#allocation9], 1 }
 0x336   :  { %2418 = vsyncpa [#allocation4], 1 }

</bundles_post_ra>
